<compile_context>
chip_gen: v7x
topology: tpu7x:2x2x1
jax: 0.10.0
libtpu: 0.0.40
codegen_flags: <defaults>
</compile_context>

<pallas_src>
import functools
import math

import jax
import jax.numpy as jnp
from jax import lax
from jax.experimental import pallas as pl
from jax.experimental.pallas import tpu as pltpu


def _source_attention_kernel(*refs, num_heads, has_mask, ln_eps):
    """One (batch, q-tile) per grid step.

    Ref shapes (leading 1 is the grid-mapped block dim):
      bias_ref (optional): (1, 1, Lk) or (1, tq, Lk) additive mask bias (f32)
      x_ref:   (1, tq, D)      enc_ref: (1, Lk, D) bf16
      wq/wk/wv_ref: (H, D, hs) bf16     wp_ref: (H, hs, D) bf16
      bq/bk/bv_ref: (H, 1, hs) f32      bp/gamma/beta: (1, D) f32
      out_ref: (1, tq, D)      attnw_ref: (1, H, tq, Lk)
      k_scr / v_scr: (H, Lk, hs) bf16 persistent VMEM scratch
    """
    if has_mask:
        (bias_ref, x_ref, enc_ref, wq_ref, bq_ref, wk_ref, bk_ref, wv_ref,
         bv_ref, wp_ref, bp_ref, gamma_ref, beta_ref,
         out_ref, attnw_ref, k_scr, v_scr) = refs
    else:
        (x_ref, enc_ref, wq_ref, bq_ref, wk_ref, bk_ref, wv_ref,
         bv_ref, wp_ref, bp_ref, gamma_ref, beta_ref,
         out_ref, attnw_ref, k_scr, v_scr) = refs
        bias_ref = None

    H = num_heads

    # --- K/V projections: once per batch element (first q-tile) -------------
    @pl.when(pl.program_id(1) == 0)
    def _():
        enc = enc_ref[0]                                        # (Lk, D) bf16
        for h in range(H):                                      # leading-dim stores only
            k_h = jnp.dot(enc, wk_ref[h],
                          preferred_element_type=jnp.float32) + bk_ref[h]
            v_h = jnp.dot(enc, wv_ref[h],
                          preferred_element_type=jnp.float32) + bv_ref[h]
            k_scr[h] = k_h.astype(k_scr.dtype)
            v_scr[h] = v_h.astype(v_scr.dtype)

    x_f32 = x_ref[0].astype(jnp.float32)                        # residual in f32
    x_bf16 = x_ref[0].astype(jnp.bfloat16)                      # MXU operand
    bias = bias_ref[0] if has_mask else None                    # (1,Lk) or (tq,Lk)

    proj = None
    for h in range(H):                                          # static unroll (small H)
        # 1/sqrt(d_model) is pre-folded into wq/bq in the wrapper.
        q_h = (jnp.dot(x_bf16, wq_ref[h], preferred_element_type=jnp.float32)
               + bq_ref[h]).astype(jnp.bfloat16)                # (tq, hs)
        # 'le,se->ls': contract last dims of both -> no explicit k transpose.
        s = lax.dot_general(q_h, k_scr[h], (((1,), (1,)), ((), ())),
                            preferred_element_type=jnp.float32)  # (tq, Lk) f32
        if has_mask:
            s = s + bias
        m = jnp.max(s, axis=-1, keepdims=True)
        e = jnp.exp(s - m)
        a = e * pl.reciprocal(jnp.sum(e, axis=-1, keepdims=True), approx=True)
        attnw_ref[0, h] = a.astype(attnw_ref.dtype)             # lane-dense over Lk
        ctx_h = jnp.dot(a.astype(jnp.bfloat16), v_scr[h],
                        preferred_element_type=jnp.float32)      # (tq, hs)
        p_h = jnp.dot(ctx_h.astype(jnp.bfloat16), wp_ref[h],
                      preferred_element_type=jnp.float32)        # (tq, D)
        proj = p_h if proj is None else proj + p_h

    # --- output projection bias + residual + LayerNorm (f32, in VMEM) -------
    y = x_f32 + proj + bp_ref[...]
    mu = jnp.mean(y, axis=-1, keepdims=True)
    cen = y - mu
    var = jnp.mean(cen * cen, axis=-1, keepdims=True)
    out = cen * lax.rsqrt(var + ln_eps) * gamma_ref[...] + beta_ref[...]
    out_ref[0] = out.astype(out_ref.dtype)


def source_attention(x, enc_output, params, num_heads, mask=None, *,
                     q_tile=None, attn_weights_dtype=jnp.bfloat16):
    """Pallas version of SourceAttention.forward (inference mode).

    x: (B, Lq, D); enc_output: (B, Lk, D); params hold PyTorch-style Linear
    weights (out, in) plus LayerNorm gamma/beta.  mask may be (Lk,), (B, Lk),
    (B, 1, Lk) (key-padding) or (B, Lq, Lk); 1 = keep, 0 = mask.
    Returns (attn_output, attn_weights) with shapes (B, Lq, D) and (B, H, Lq, Lk).
    """
    B, Lq, D = x.shape
    _, Lk, _ = enc_output.shape
    H = num_heads
    assert D % H == 0
    hs = D // H
    inv_scale = 1.0 / math.sqrt(D)          # module scales by sqrt(d_model)

    # ---- q tiling ------------------------------------------------------------
    if q_tile is None:
        if Lq <= 256:
            q_tile = Lq
        else:
            q_tile = Lq
            for cand in (256, 128, 64, 32, 16, 8):
                if Lq % cand == 0:
                    q_tile = cand
                    break
    if Lq % q_tile != 0 or (q_tile != Lq and q_tile % 8 != 0):
        raise ValueError(f"q_tile={q_tile} must divide Lq={Lq} and be a multiple of 8")
    n_q_tiles = Lq // q_tile

    f32, bf16 = jnp.float32, jnp.bfloat16

    # ---- weight prep: head-major, bf16, scale folded into Wq/bq --------------
    def head_major_in(w):    # torch Linear weight (out, in) -> (H, D_in, hs)
        return jnp.transpose(w).reshape(D, H, hs).transpose(1, 0, 2)

    def head_major_out(w):   # projection weight (out, in) -> (H, hs, D_out)
        return jnp.transpose(w).reshape(H, hs, D)

    wq_h = (head_major_in(params["wq"]) * inv_scale).astype(bf16)
    wk_h = head_major_in(params["wk"]).astype(bf16)
    wv_h = head_major_in(params["wv"]).astype(bf16)
    wp_h = head_major_out(params["wp"]).astype(bf16)

    def head_bias(b):
        return jnp.asarray(b, f32).reshape(H, 1, hs)

    bq_h = head_bias(params["bq"]) * inv_scale
    bk_h = head_bias(params["bk"])
    bv_h = head_bias(params["bv"])
    row = lambda a: jnp.asarray(a, f32).reshape(1, D)
    bp, gamma, beta = row(params["bp"]), row(params["gamma"]), row(params["beta"])

    enc_bf16 = enc_output.astype(bf16)       # only feeds the MXU -> cast once

    # ---- optional mask -> additive bias ---------------------------------------
    has_mask = mask is not None
    in_arrays, in_specs = [], []
    compact = False
    if has_mask:
        m = jnp.asarray(mask)
        if m.ndim == 1:
            m = m[None, None, :]
        elif m.ndim == 2:
            m = m[:, None, :]
        assert m.ndim == 3 and m.shape[-1] == Lk
        bias = jnp.where(m == 0, jnp.float32(-1e9), jnp.float32(0.0))
        compact = bias.shape[1] == 1
        if not compact:
            assert bias.shape[1] == Lq
        batched = bias.shape[0] > 1
        if compact:
            bidx = (lambda b, q: (b, 0, 0)) if batched else (lambda b, q: (0, 0, 0))
            in_specs.append(pl.BlockSpec((1, 1, Lk), bidx))
        else:
            bidx = (lambda b, q: (b, q, 0)) if batched else (lambda b, q: (0, q, 0))
            in_specs.append(pl.BlockSpec((1, q_tile, Lk), bidx))
        in_arrays.append(bias)

    const3 = lambda b, q: (0, 0, 0)
    const2 = lambda b, q: (0, 0)
    in_arrays += [x, enc_bf16, wq_h, bq_h, wk_h, bk_h, wv_h, bv_h,
                  wp_h, bp, gamma, beta]
    in_specs += [
        pl.BlockSpec((1, q_tile, D), lambda b, q: (b, q, 0)),
        pl.BlockSpec((1, Lk, D), lambda b, q: (b, 0, 0)),
        pl.BlockSpec((H, D, hs), const3), pl.BlockSpec((H, 1, hs), const3),
        pl.BlockSpec((H, D, hs), const3), pl.BlockSpec((H, 1, hs), const3),
        pl.BlockSpec((H, D, hs), const3), pl.BlockSpec((H, 1, hs), const3),
        pl.BlockSpec((H, hs, D), const3), pl.BlockSpec((1, D), const2),
        pl.BlockSpec((1, D), const2), pl.BlockSpec((1, D), const2),
    ]

    # ---- VMEM budget estimate (double-buffered blocks + scratch + temps) ------
    def _nbytes(shape, dtype):
        n = 1
        for s in shape:
            n *= int(s)
        return n * jnp.dtype(dtype).itemsize

    weight_bytes = (3 * _nbytes((H, D, hs), bf16) + _nbytes((H, hs, D), bf16)
                    + 3 * _nbytes((H, 1, hs), f32) + 3 * _nbytes((1, D), f32))
    io_bytes = (2 * _nbytes((1, q_tile, D), x.dtype)
                + 2 * _nbytes((1, Lk, D), bf16)
                + 2 * _nbytes((1, q_tile, D), x.dtype)
                + 2 * _nbytes((1, H, q_tile, Lk), attn_weights_dtype))
    if has_mask:
        io_bytes += 2 * _nbytes((1, 1 if compact else q_tile, Lk), f32)
    scratch_bytes = 2 * _nbytes((H, Lk, hs), bf16)
    interm_bytes = 4 * _nbytes((q_tile, Lk), f32) + 4 * _nbytes((q_tile, D), f32)
    est = 2 * weight_bytes + io_bytes + scratch_bytes + interm_bytes
    vmem_limit = int(min(112 * (1 << 20), max(32 * (1 << 20), 2 * est)))

    kernel = functools.partial(_source_attention_kernel,
                               num_heads=H, has_mask=has_mask, ln_eps=1e-5)

    out, attn_w = pl.pallas_call(
        kernel,
        out_shape=(
            jax.ShapeDtypeStruct((B, Lq, D), x.dtype),
            jax.ShapeDtypeStruct((B, H, Lq, Lk), attn_weights_dtype),
        ),
        grid_spec=pltpu.PrefetchScalarGridSpec(
            num_scalar_prefetch=0,
            grid=(B, n_q_tiles),
            in_specs=in_specs,
            out_specs=[
                pl.BlockSpec((1, q_tile, D), lambda b, q: (b, q, 0)),
                pl.BlockSpec((1, H, q_tile, Lk), lambda b, q: (b, 0, q, 0)),
            ],
            scratch_shapes=[
                pltpu.VMEM((H, Lk, hs), bf16),   # K, persistent across q-tiles
                pltpu.VMEM((H, Lk, hs), bf16),   # V
            ],
        ),
        compiler_params=pltpu.CompilerParams(
            dimension_semantics=("parallel", "arbitrary"),
            vmem_limit_bytes=vmem_limit),
    )(*in_arrays)
    return out, attn_w


def source_attention_reference(x, enc_output, params, num_heads, mask=None):
    """Pure-JAX transcription of the PyTorch forward (eval mode, dropout = identity)."""
    B, Lq, D = x.shape
    Lk = enc_output.shape[1]
    hs = D // num_heads

    def linear(inp, w, b):   # PyTorch Linear: y = inp @ W^T + b, W is (out, in)
        return jnp.einsum('bli,oi->blo', inp, w) + b

    q = linear(x, params["wq"], params["bq"]).reshape(B, Lq, num_heads, hs).transpose(0, 2, 1, 3)
    k = linear(enc_output, params["wk"], params["bk"]).reshape(B, Lk, num_heads, hs).transpose(0, 2, 1, 3)
    v = linear(enc_output, params["wv"], params["bv"]).reshape(B, Lk, num_heads, hs).transpose(0, 2, 1, 3)

    scores = jnp.einsum('bhqe,bhke->bhqk', q, k) / math.sqrt(D)
    if mask is not None:
        m = jnp.asarray(mask)
        if m.ndim == 1:
            m = m[None, None, :]
        elif m.ndim == 2:
            m = m[:, None, :]
        scores = jnp.where(m[:, None, :, :] == 0, -1e9, scores)
    attn = jax.nn.softmax(scores, axis=-1)

    ctx = jnp.einsum('bhqk,bhke->bhqe', attn, v).transpose(0, 2, 1, 3).reshape(B, Lq, D)
    proj = jnp.einsum('bli,oi->blo', ctx, params["wp"]) + params["bp"]
    y = x + proj
    mu = y.mean(-1, keepdims=True)
    var = ((y - mu) ** 2).mean(-1, keepdims=True)
    out = (y - mu) / jnp.sqrt(var + 1e-5) * params["gamma"] + params["beta"]
    return out, attn


if __name__ == "__main__":
    B, Lq, Lk = 2, 16, 16
    d_model, num_heads = 32, 4

    key = jax.random.PRNGKey(0)
    ks = jax.random.split(key, 12)

    def w(k):
        return jax.random.normal(k, (d_model, d_model), jnp.float32) / math.sqrt(d_model)

    def b(k):
        return 0.1 * jax.random.normal(k, (d_model,), jnp.float32)

    params = dict(
        wq=w(ks[0]), bq=b(ks[1]),
        wk=w(ks[2]), bk=b(ks[3]),
        wv=w(ks[4]), bv=b(ks[5]),
        wp=w(ks[6]), bp=b(ks[7]),
        gamma=1.0 + 0.1 * jax.random.normal(ks[8], (d_model,), jnp.float32),
        beta=0.1 * jax.random.normal(ks[9], (d_model,), jnp.float32),
    )
    x = jax.random.normal(ks[10], (B, Lq, d_model), jnp.float32)
    enc = jax.random.normal(ks[11], (B, Lk, d_model), jnp.float32)

    TOL = dict(rtol=3e-2, atol=3e-2)   # bf16 MXU operands + bf16 attn-weights output

    # --- no-mask path (module default); q_tile=8 exercises the q-tile grid axis ---
    out, attn = source_attention(x, enc, params, num_heads, q_tile=8)
    out, attn = jax.block_until_ready((out, attn))
    out_r, attn_r = source_attention_reference(x, enc, params, num_heads)
    assert out.shape == out_r.shape and attn.shape == attn_r.shape
    assert jnp.allclose(out, out_r, **TOL), "output mismatch (no mask)"
    assert jnp.allclose(attn.astype(jnp.float32), attn_r, **TOL), "attn mismatch (no mask)"

    # --- compact key-padding mask path (B, Lk); 1 = keep, 0 = mask ---
    kp_mask = jnp.ones((B, Lk), jnp.int32).at[1, Lk - 4:].set(0)
    out_m, attn_m = source_attention(x, enc, params, num_heads, mask=kp_mask, q_tile=8)
    out_m, attn_m = jax.block_until_ready((out_m, attn_m))
    out_mr, attn_mr = source_attention_reference(x, enc, params, num_heads, mask=kp_mask)
    assert jnp.allclose(out_m, out_mr, **TOL), "output mismatch (key-padding mask)"
    assert jnp.allclose(attn_m.astype(jnp.float32), attn_mr, **TOL), "attn mismatch (key-padding mask)"

    # --- dense (B, Lq, Lk) mask path ---
    dense_mask = jnp.broadcast_to(kp_mask[:, None, :], (B, Lq, Lk))
    out_d, attn_d = source_attention(x, enc, params, num_heads, mask=dense_mask, q_tile=8)
    out_d, attn_d = jax.block_until_ready((out_d, attn_d))
    out_dr, attn_dr = source_attention_reference(x, enc, params, num_heads, mask=dense_mask)
    assert jnp.allclose(out_d, out_dr, **TOL), "output mismatch (dense mask)"
    assert jnp.allclose(attn_d.astype(jnp.float32), attn_dr, **TOL), "attn mismatch (dense mask)"

    print("KERNEL_OK")
</pallas_src>

<mosaic_0001>
module attributes {stable_mosaic.version = 11 : i64} {
  func.func @_source_attention_kernel(%arg0: i32, %arg1: i32, %arg2: memref<1x8x32xf32, #tpu.memory_space<vmem>>, %arg3: memref<1x16x32xbf16, #tpu.memory_space<vmem>>, %arg4: memref<4x32x8xbf16, #tpu.memory_space<vmem>>, %arg5: memref<4x1x8xf32, #tpu.memory_space<vmem>>, %arg6: memref<4x32x8xbf16, #tpu.memory_space<vmem>>, %arg7: memref<4x1x8xf32, #tpu.memory_space<vmem>>, %arg8: memref<4x32x8xbf16, #tpu.memory_space<vmem>>, %arg9: memref<4x1x8xf32, #tpu.memory_space<vmem>>, %arg10: memref<4x8x32xbf16, #tpu.memory_space<vmem>>, %arg11: memref<1x32xf32, #tpu.memory_space<vmem>>, %arg12: memref<1x32xf32, #tpu.memory_space<vmem>>, %arg13: memref<1x32xf32, #tpu.memory_space<vmem>>, %arg14: memref<1x8x32xf32, #tpu.memory_space<vmem>>, %arg15: memref<1x4x8x16xbf16, #tpu.memory_space<vmem>>, %arg16: memref<4x16x8xbf16, #tpu.memory_space<vmem>>, %arg17: memref<4x16x8xbf16, #tpu.memory_space<vmem>>) attributes {dimension_semantics = [#tpu.dimension_semantics<parallel>, #tpu.dimension_semantics<arbitrary>], iteration_bounds = array<i64: 2, 2>, scalar_prefetch = 0 : i64, scratch_operands = 2 : i64, tpu.core_type = #tpu.core_type<tc>, window_params = [{transform_indices = @transform_0, window_bounds = array<i64: 1, 8, 32>}, {transform_indices = @transform_1, window_bounds = array<i64: 1, 16, 32>}, {pipeline_mode = #tpu.pipeline_mode<synchronous>, transform_indices = @transform_2, window_bounds = array<i64: 4, 32, 8>}, {pipeline_mode = #tpu.pipeline_mode<synchronous>, transform_indices = @transform_3, window_bounds = array<i64: 4, 1, 8>}, {pipeline_mode = #tpu.pipeline_mode<synchronous>, transform_indices = @transform_4, window_bounds = array<i64: 4, 32, 8>}, {pipeline_mode = #tpu.pipeline_mode<synchronous>, transform_indices = @transform_5, window_bounds = array<i64: 4, 1, 8>}, {pipeline_mode = #tpu.pipeline_mode<synchronous>, transform_indices = @transform_6, window_bounds = array<i64: 4, 32, 8>}, {pipeline_mode = #tpu.pipeline_mode<synchronous>, transform_indices = @transform_7, window_bounds = array<i64: 4, 1, 8>}, {pipeline_mode = #tpu.pipeline_mode<synchronous>, transform_indices = @transform_8, window_bounds = array<i64: 4, 8, 32>}, {pipeline_mode = #tpu.pipeline_mode<synchronous>, transform_indices = @transform_9, window_bounds = array<i64: 1, 32>}, {pipeline_mode = #tpu.pipeline_mode<synchronous>, transform_indices = @transform_10, window_bounds = array<i64: 1, 32>}, {pipeline_mode = #tpu.pipeline_mode<synchronous>, transform_indices = @transform_11, window_bounds = array<i64: 1, 32>}, {transform_indices = @transform_12, window_bounds = array<i64: 1, 8, 32>}, {transform_indices = @transform_13, window_bounds = array<i64: 1, 4, 8, 16>}]} {
    %c0_i32 = arith.constant 0 : i32
    %0 = arith.cmpi eq, %arg1, %c0_i32 : i32
    %1 = arith.extui %0 : i1 to i32
    %c0_i32_0 = arith.constant 0 : i32
    %2 = arith.cmpi ne, %1, %c0_i32_0 : i32
    scf.if %2 {
      %c0_116 = arith.constant 0 : index
      %c0_117 = arith.constant 0 : index
      %c0_118 = arith.constant 0 : index
      %172 = vector.load %arg3[%c0_116, %c0_117, %c0_118] : memref<1x16x32xbf16, #tpu.memory_space<vmem>>, vector<1x16x32xbf16>
      %173 = vector.shape_cast %172 : vector<1x16x32xbf16> to vector<16x32xbf16>
      %c0_119 = arith.constant 0 : index
      %c0_120 = arith.constant 0 : index
      %c0_121 = arith.constant 0 : index
      %174 = vector.load %arg6[%c0_119, %c0_120, %c0_121] : memref<4x32x8xbf16, #tpu.memory_space<vmem>>, vector<1x32x8xbf16>
      %175 = vector.shape_cast %174 : vector<1x32x8xbf16> to vector<32x8xbf16>
      %cst_122 = arith.constant dense<0.000000e+00> : vector<16x8xf32>
      %176 = tpu.matmul %173, %175, %cst_122 {dimension_numbers = #tpu.dot_dimension_numbers<[1], [0], [0], [1], [0, 0, 1, 1], [], []>} : vector<16x32xbf16>, vector<32x8xbf16>, vector<16x8xf32> -> vector<16x8xf32>
      %c0_123 = arith.constant 0 : index
      %c0_124 = arith.constant 0 : index
      %c0_125 = arith.constant 0 : index
      %177 = vector.load %arg7[%c0_123, %c0_124, %c0_125] : memref<4x1x8xf32, #tpu.memory_space<vmem>>, vector<1x1x8xf32>
      %178 = vector.shape_cast %177 : vector<1x1x8xf32> to vector<1x8xf32>
      %179 = vector.broadcast %178 : vector<1x8xf32> to vector<16x8xf32>
      %180 = arith.addf %176, %179 : vector<16x8xf32>
      %c0_126 = arith.constant 0 : index
      %c0_127 = arith.constant 0 : index
      %c0_128 = arith.constant 0 : index
      %181 = vector.load %arg8[%c0_126, %c0_127, %c0_128] : memref<4x32x8xbf16, #tpu.memory_space<vmem>>, vector<1x32x8xbf16>
      %182 = vector.shape_cast %181 : vector<1x32x8xbf16> to vector<32x8xbf16>
      %cst_129 = arith.constant dense<0.000000e+00> : vector<16x8xf32>
      %183 = tpu.matmul %173, %182, %cst_129 {dimension_numbers = #tpu.dot_dimension_numbers<[1], [0], [0], [1], [0, 0, 1, 1], [], []>} : vector<16x32xbf16>, vector<32x8xbf16>, vector<16x8xf32> -> vector<16x8xf32>
      %c0_130 = arith.constant 0 : index
      %c0_131 = arith.constant 0 : index
      %c0_132 = arith.constant 0 : index
      %184 = vector.load %arg9[%c0_130, %c0_131, %c0_132] : memref<4x1x8xf32, #tpu.memory_space<vmem>>, vector<1x1x8xf32>
      %185 = vector.shape_cast %184 : vector<1x1x8xf32> to vector<1x8xf32>
      %186 = vector.broadcast %185 : vector<1x8xf32> to vector<16x8xf32>
      %187 = arith.addf %183, %186 : vector<16x8xf32>
      %188 = arith.truncf %180 : vector<16x8xf32> to vector<16x8xbf16>
      %c0_133 = arith.constant 0 : index
      %c0_134 = arith.constant 0 : index
      %c0_135 = arith.constant 0 : index
      %189 = vector.load %arg16[%c0_133, %c0_134, %c0_135] : memref<4x16x8xbf16, #tpu.memory_space<vmem>>, vector<1x16x8xbf16>
      %190 = vector.shape_cast %189 : vector<1x16x8xbf16> to vector<16x8xbf16>
      %191 = vector.shape_cast %188 : vector<16x8xbf16> to vector<1x16x8xbf16>
      tpu.vector_store %arg16[%c0_133, %c0_134, %c0_135], %191 {strides = array<i32>} : memref<4x16x8xbf16, #tpu.memory_space<vmem>>, vector<1x16x8xbf16>,
      %192 = arith.truncf %187 : vector<16x8xf32> to vector<16x8xbf16>
      %c0_136 = arith.constant 0 : index
      %c0_137 = arith.constant 0 : index
      %c0_138 = arith.constant 0 : index
      %193 = vector.load %arg17[%c0_136, %c0_137, %c0_138] : memref<4x16x8xbf16, #tpu.memory_space<vmem>>, vector<1x16x8xbf16>
      %194 = vector.shape_cast %193 : vector<1x16x8xbf16> to vector<16x8xbf16>
      %195 = vector.shape_cast %192 : vector<16x8xbf16> to vector<1x16x8xbf16>
      tpu.vector_store %arg17[%c0_136, %c0_137, %c0_138], %195 {strides = array<i32>} : memref<4x16x8xbf16, #tpu.memory_space<vmem>>, vector<1x16x8xbf16>,
      %c1_139 = arith.constant 1 : index
      %c0_140 = arith.constant 0 : index
      %c0_141 = arith.constant 0 : index
      %196 = vector.load %arg6[%c1_139, %c0_140, %c0_141] : memref<4x32x8xbf16, #tpu.memory_space<vmem>>, vector<1x32x8xbf16>
      %197 = vector.shape_cast %196 : vector<1x32x8xbf16> to vector<32x8xbf16>
      %cst_142 = arith.constant dense<0.000000e+00> : vector<16x8xf32>
      %198 = tpu.matmul %173, %197, %cst_142 {dimension_numbers = #tpu.dot_dimension_numbers<[1], [0], [0], [1], [0, 0, 1, 1], [], []>} : vector<16x32xbf16>, vector<32x8xbf16>, vector<16x8xf32> -> vector<16x8xf32>
      %c1_143 = arith.constant 1 : index
      %c0_144 = arith.constant 0 : index
      %c0_145 = arith.constant 0 : index
      %199 = vector.load %arg7[%c1_143, %c0_144, %c0_145] : memref<4x1x8xf32, #tpu.memory_space<vmem>>, vector<1x1x8xf32>
      %200 = vector.shape_cast %199 : vector<1x1x8xf32> to vector<1x8xf32>
      %201 = vector.broadcast %200 : vector<1x8xf32> to vector<16x8xf32>
      %202 = arith.addf %198, %201 : vector<16x8xf32>
      %c1_146 = arith.constant 1 : index
      %c0_147 = arith.constant 0 : index
      %c0_148 = arith.constant 0 : index
      %203 = vector.load %arg8[%c1_146, %c0_147, %c0_148] : memref<4x32x8xbf16, #tpu.memory_space<vmem>>, vector<1x32x8xbf16>
      %204 = vector.shape_cast %203 : vector<1x32x8xbf16> to vector<32x8xbf16>
      %cst_149 = arith.constant dense<0.000000e+00> : vector<16x8xf32>
      %205 = tpu.matmul %173, %204, %cst_149 {dimension_numbers = #tpu.dot_dimension_numbers<[1], [0], [0], [1], [0, 0, 1, 1], [], []>} : vector<16x32xbf16>, vector<32x8xbf16>, vector<16x8xf32> -> vector<16x8xf32>
      %c1_150 = arith.constant 1 : index
      %c0_151 = arith.constant 0 : index
      %c0_152 = arith.constant 0 : index
      %206 = vector.load %arg9[%c1_150, %c0_151, %c0_152] : memref<4x1x8xf32, #tpu.memory_space<vmem>>, vector<1x1x8xf32>
      %207 = vector.shape_cast %206 : vector<1x1x8xf32> to vector<1x8xf32>
      %208 = vector.broadcast %207 : vector<1x8xf32> to vector<16x8xf32>
      %209 = arith.addf %205, %208 : vector<16x8xf32>
      %210 = arith.truncf %202 : vector<16x8xf32> to vector<16x8xbf16>
      %c1_153 = arith.constant 1 : index
      %c0_154 = arith.constant 0 : index
      %c0_155 = arith.constant 0 : index
      %211 = vector.load %arg16[%c1_153, %c0_154, %c0_155] : memref<4x16x8xbf16, #tpu.memory_space<vmem>>, vector<1x16x8xbf16>
      %212 = vector.shape_cast %211 : vector<1x16x8xbf16> to vector<16x8xbf16>
      %213 = vector.shape_cast %210 : vector<16x8xbf16> to vector<1x16x8xbf16>
      tpu.vector_store %arg16[%c1_153, %c0_154, %c0_155], %213 {strides = array<i32>} : memref<4x16x8xbf16, #tpu.memory_space<vmem>>, vector<1x16x8xbf16>,
      %214 = arith.truncf %209 : vector<16x8xf32> to vector<16x8xbf16>
      %c1_156 = arith.constant 1 : index
      %c0_157 = arith.constant 0 : index
      %c0_158 = arith.constant 0 : index
      %215 = vector.load %arg17[%c1_156, %c0_157, %c0_158] : memref<4x16x8xbf16, #tpu.memory_space<vmem>>, vector<1x16x8xbf16>
      %216 = vector.shape_cast %215 : vector<1x16x8xbf16> to vector<16x8xbf16>
      %217 = vector.shape_cast %214 : vector<16x8xbf16> to vector<1x16x8xbf16>
      tpu.vector_store %arg17[%c1_156, %c0_157, %c0_158], %217 {strides = array<i32>} : memref<4x16x8xbf16, #tpu.memory_space<vmem>>, vector<1x16x8xbf16>,
      %c2_159 = arith.constant 2 : index
      %c0_160 = arith.constant 0 : index
      %c0_161 = arith.constant 0 : index
      %218 = vector.load %arg6[%c2_159, %c0_160, %c0_161] : memref<4x32x8xbf16, #tpu.memory_space<vmem>>, vector<1x32x8xbf16>
      %219 = vector.shape_cast %218 : vector<1x32x8xbf16> to vector<32x8xbf16>
      %cst_162 = arith.constant dense<0.000000e+00> : vector<16x8xf32>
      %220 = tpu.matmul %173, %219, %cst_162 {dimension_numbers = #tpu.dot_dimension_numbers<[1], [0], [0], [1], [0, 0, 1, 1], [], []>} : vector<16x32xbf16>, vector<32x8xbf16>, vector<16x8xf32> -> vector<16x8xf32>
      %c2_163 = arith.constant 2 : index
      %c0_164 = arith.constant 0 : index
      %c0_165 = arith.constant 0 : index
      %221 = vector.load %arg7[%c2_163, %c0_164, %c0_165] : memref<4x1x8xf32, #tpu.memory_space<vmem>>, vector<1x1x8xf32>
      %222 = vector.shape_cast %221 : vector<1x1x8xf32> to vector<1x8xf32>
      %223 = vector.broadcast %222 : vector<1x8xf32> to vector<16x8xf32>
      %224 = arith.addf %220, %223 : vector<16x8xf32>
      %c2_166 = arith.constant 2 : index
      %c0_167 = arith.constant 0 : index
      %c0_168 = arith.constant 0 : index
      %225 = vector.load %arg8[%c2_166, %c0_167, %c0_168] : memref<4x32x8xbf16, #tpu.memory_space<vmem>>, vector<1x32x8xbf16>
      %226 = vector.shape_cast %225 : vector<1x32x8xbf16> to vector<32x8xbf16>
      %cst_169 = arith.constant dense<0.000000e+00> : vector<16x8xf32>
      %227 = tpu.matmul %173, %226, %cst_169 {dimension_numbers = #tpu.dot_dimension_numbers<[1], [0], [0], [1], [0, 0, 1, 1], [], []>} : vector<16x32xbf16>, vector<32x8xbf16>, vector<16x8xf32> -> vector<16x8xf32>
      %c2_170 = arith.constant 2 : index
      %c0_171 = arith.constant 0 : index
      %c0_172 = arith.constant 0 : index
      %228 = vector.load %arg9[%c2_170, %c0_171, %c0_172] : memref<4x1x8xf32, #tpu.memory_space<vmem>>, vector<1x1x8xf32>
      %229 = vector.shape_cast %228 : vector<1x1x8xf32> to vector<1x8xf32>
      %230 = vector.broadcast %229 : vector<1x8xf32> to vector<16x8xf32>
      %231 = arith.addf %227, %230 : vector<16x8xf32>
      %232 = arith.truncf %224 : vector<16x8xf32> to vector<16x8xbf16>
      %c2_173 = arith.constant 2 : index
      %c0_174 = arith.constant 0 : index
      %c0_175 = arith.constant 0 : index
      %233 = vector.load %arg16[%c2_173, %c0_174, %c0_175] : memref<4x16x8xbf16, #tpu.memory_space<vmem>>, vector<1x16x8xbf16>
      %234 = vector.shape_cast %233 : vector<1x16x8xbf16> to vector<16x8xbf16>
      %235 = vector.shape_cast %232 : vector<16x8xbf16> to vector<1x16x8xbf16>
      tpu.vector_store %arg16[%c2_173, %c0_174, %c0_175], %235 {strides = array<i32>} : memref<4x16x8xbf16, #tpu.memory_space<vmem>>, vector<1x16x8xbf16>,
      %236 = arith.truncf %231 : vector<16x8xf32> to vector<16x8xbf16>
      %c2_176 = arith.constant 2 : index
      %c0_177 = arith.constant 0 : index
      %c0_178 = arith.constant 0 : index
      %237 = vector.load %arg17[%c2_176, %c0_177, %c0_178] : memref<4x16x8xbf16, #tpu.memory_space<vmem>>, vector<1x16x8xbf16>
      %238 = vector.shape_cast %237 : vector<1x16x8xbf16> to vector<16x8xbf16>
      %239 = vector.shape_cast %236 : vector<16x8xbf16> to vector<1x16x8xbf16>
      tpu.vector_store %arg17[%c2_176, %c0_177, %c0_178], %239 {strides = array<i32>} : memref<4x16x8xbf16, #tpu.memory_space<vmem>>, vector<1x16x8xbf16>,
      %c3_179 = arith.constant 3 : index
      %c0_180 = arith.constant 0 : index
      %c0_181 = arith.constant 0 : index
      %240 = vector.load %arg6[%c3_179, %c0_180, %c0_181] : memref<4x32x8xbf16, #tpu.memory_space<vmem>>, vector<1x32x8xbf16>
      %241 = vector.shape_cast %240 : vector<1x32x8xbf16> to vector<32x8xbf16>
      %cst_182 = arith.constant dense<0.000000e+00> : vector<16x8xf32>
      %242 = tpu.matmul %173, %241, %cst_182 {dimension_numbers = #tpu.dot_dimension_numbers<[1], [0], [0], [1], [0, 0, 1, 1], [], []>} : vector<16x32xbf16>, vector<32x8xbf16>, vector<16x8xf32> -> vector<16x8xf32>
      %c3_183 = arith.constant 3 : index
      %c0_184 = arith.constant 0 : index
      %c0_185 = arith.constant 0 : index
      %243 = vector.load %arg7[%c3_183, %c0_184, %c0_185] : memref<4x1x8xf32, #tpu.memory_space<vmem>>, vector<1x1x8xf32>
      %244 = vector.shape_cast %243 : vector<1x1x8xf32> to vector<1x8xf32>
      %245 = vector.broadcast %244 : vector<1x8xf32> to vector<16x8xf32>
      %246 = arith.addf %242, %245 : vector<16x8xf32>
      %c3_186 = arith.constant 3 : index
      %c0_187 = arith.constant 0 : index
      %c0_188 = arith.constant 0 : index
      %247 = vector.load %arg8[%c3_186, %c0_187, %c0_188] : memref<4x32x8xbf16, #tpu.memory_space<vmem>>, vector<1x32x8xbf16>
      %248 = vector.shape_cast %247 : vector<1x32x8xbf16> to vector<32x8xbf16>
      %cst_189 = arith.constant dense<0.000000e+00> : vector<16x8xf32>
      %249 = tpu.matmul %173, %248, %cst_189 {dimension_numbers = #tpu.dot_dimension_numbers<[1], [0], [0], [1], [0, 0, 1, 1], [], []>} : vector<16x32xbf16>, vector<32x8xbf16>, vector<16x8xf32> -> vector<16x8xf32>
      %c3_190 = arith.constant 3 : index
      %c0_191 = arith.constant 0 : index
      %c0_192 = arith.constant 0 : index
      %250 = vector.load %arg9[%c3_190, %c0_191, %c0_192] : memref<4x1x8xf32, #tpu.memory_space<vmem>>, vector<1x1x8xf32>
      %251 = vector.shape_cast %250 : vector<1x1x8xf32> to vector<1x8xf32>
      %252 = vector.broadcast %251 : vector<1x8xf32> to vector<16x8xf32>
      %253 = arith.addf %249, %252 : vector<16x8xf32>
      %254 = arith.truncf %246 : vector<16x8xf32> to vector<16x8xbf16>
      %c3_193 = arith.constant 3 : index
      %c0_194 = arith.constant 0 : index
      %c0_195 = arith.constant 0 : index
      %255 = vector.load %arg16[%c3_193, %c0_194, %c0_195] : memref<4x16x8xbf16, #tpu.memory_space<vmem>>, vector<1x16x8xbf16>
      %256 = vector.shape_cast %255 : vector<1x16x8xbf16> to vector<16x8xbf16>
      %257 = vector.shape_cast %254 : vector<16x8xbf16> to vector<1x16x8xbf16>
      tpu.vector_store %arg16[%c3_193, %c0_194, %c0_195], %257 {strides = array<i32>} : memref<4x16x8xbf16, #tpu.memory_space<vmem>>, vector<1x16x8xbf16>,
      %258 = arith.truncf %253 : vector<16x8xf32> to vector<16x8xbf16>
      %c3_196 = arith.constant 3 : index
      %c0_197 = arith.constant 0 : index
      %c0_198 = arith.constant 0 : index
      %259 = vector.load %arg17[%c3_196, %c0_197, %c0_198] : memref<4x16x8xbf16, #tpu.memory_space<vmem>>, vector<1x16x8xbf16>
      %260 = vector.shape_cast %259 : vector<1x16x8xbf16> to vector<16x8xbf16>
      %261 = vector.shape_cast %258 : vector<16x8xbf16> to vector<1x16x8xbf16>
      tpu.vector_store %arg17[%c3_196, %c0_197, %c0_198], %261 {strides = array<i32>} : memref<4x16x8xbf16, #tpu.memory_space<vmem>>, vector<1x16x8xbf16>,
    } else {
    }
    %c0 = arith.constant 0 : index
    %c0_1 = arith.constant 0 : index
    %c0_2 = arith.constant 0 : index
    %3 = vector.load %arg2[%c0, %c0_1, %c0_2] : memref<1x8x32xf32, #tpu.memory_space<vmem>>, vector<1x8x32xf32>
    %4 = vector.shape_cast %3 : vector<1x8x32xf32> to vector<8x32xf32>
    %c0_3 = arith.constant 0 : index
    %c0_4 = arith.constant 0 : index
    %c0_5 = arith.constant 0 : index
    %5 = vector.load %arg2[%c0_3, %c0_4, %c0_5] : memref<1x8x32xf32, #tpu.memory_space<vmem>>, vector<1x8x32xf32>
    %6 = vector.shape_cast %5 : vector<1x8x32xf32> to vector<8x32xf32>
    %7 = arith.truncf %6 : vector<8x32xf32> to vector<8x32xbf16>
    %c0_6 = arith.constant 0 : index
    %c0_7 = arith.constant 0 : index
    %c0_8 = arith.constant 0 : index
    %8 = vector.load %arg4[%c0_6, %c0_7, %c0_8] : memref<4x32x8xbf16, #tpu.memory_space<vmem>>, vector<1x32x8xbf16>
    %9 = vector.shape_cast %8 : vector<1x32x8xbf16> to vector<32x8xbf16>
    %cst = arith.constant dense<0.000000e+00> : vector<8x8xf32>
    %10 = tpu.matmul %7, %9, %cst {dimension_numbers = #tpu.dot_dimension_numbers<[1], [0], [0], [1], [0, 0, 1, 1], [], []>} : vector<8x32xbf16>, vector<32x8xbf16>, vector<8x8xf32> -> vector<8x8xf32>
    %c0_9 = arith.constant 0 : index
    %c0_10 = arith.constant 0 : index
    %c0_11 = arith.constant 0 : index
    %11 = vector.load %arg5[%c0_9, %c0_10, %c0_11] : memref<4x1x8xf32, #tpu.memory_space<vmem>>, vector<1x1x8xf32>
    %12 = vector.shape_cast %11 : vector<1x1x8xf32> to vector<1x8xf32>
    %13 = vector.broadcast %12 : vector<1x8xf32> to vector<8x8xf32>
    %14 = arith.addf %10, %13 : vector<8x8xf32>
    %15 = arith.truncf %14 : vector<8x8xf32> to vector<8x8xbf16>
    %c0_12 = arith.constant 0 : index
    %c0_13 = arith.constant 0 : index
    %c0_14 = arith.constant 0 : index
    %16 = vector.load %arg16[%c0_12, %c0_13, %c0_14] : memref<4x16x8xbf16, #tpu.memory_space<vmem>>, vector<1x16x8xbf16>
    %17 = vector.shape_cast %16 : vector<1x16x8xbf16> to vector<16x8xbf16>
    %cst_15 = arith.constant dense<0.000000e+00> : vector<8x16xf32>
    %18 = tpu.matmul %15, %17, %cst_15 {dimension_numbers = #tpu.dot_dimension_numbers<[1], [1], [0], [0], [0, 0, 1, 0], [], []>} : vector<8x8xbf16>, vector<16x8xbf16>, vector<8x16xf32> -> vector<8x16xf32>
    %cst_16 = arith.constant dense<0xFF800000> : vector<8xf32>
    %19 = vector.multi_reduction <maximumf>, %18, %cst_16 [1] : vector<8x16xf32> to vector<8xf32>
    %20 = vector.shape_cast %19 : vector<8xf32> to vector<8x1xf32>
    %21 = vector.broadcast %20 : vector<8x1xf32> to vector<8x16xf32>
    %22 = arith.subf %18, %21 : vector<8x16xf32>
    %23 = math.exp %22 : vector<8x16xf32>
    %cst_17 = arith.constant dense<0.000000e+00> : vector<8xf32>
    %24 = vector.multi_reduction <add>, %23, %cst_17 [1] : vector<8x16xf32> to vector<8xf32>
    %25 = vector.shape_cast %24 : vector<8xf32> to vector<8x1xf32>
    %26 = tpu.reciprocal %25 {approx = true} : vector<8x1xf32> -> vector<8x1xf32>
    %27 = vector.broadcast %26 : vector<8x1xf32> to vector<8x16xf32>
    %28 = arith.mulf %23, %27 : vector<8x16xf32>
    %29 = arith.truncf %28 : vector<8x16xf32> to vector<8x16xbf16>
    %c0_18 = arith.constant 0 : index
    %c0_19 = arith.constant 0 : index
    %c0_20 = arith.constant 0 : index
    %c0_21 = arith.constant 0 : index
    %30 = vector.load %arg15[%c0_18, %c0_19, %c0_20, %c0_21] : memref<1x4x8x16xbf16, #tpu.memory_space<vmem>>, vector<1x1x8x16xbf16>
    %31 = vector.shape_cast %30 : vector<1x1x8x16xbf16> to vector<8x16xbf16>
    %32 = vector.shape_cast %29 : vector<8x16xbf16> to vector<1x1x8x16xbf16>
    tpu.vector_store %arg15[%c0_18, %c0_19, %c0_20, %c0_21], %32 {strides = array<i32>} : memref<1x4x8x16xbf16, #tpu.memory_space<vmem>>, vector<1x1x8x16xbf16>,
    %33 = arith.truncf %28 : vector<8x16xf32> to vector<8x16xbf16>
    %c0_22 = arith.constant 0 : index
    %c0_23 = arith.constant 0 : index
    %c0_24 = arith.constant 0 : index
    %34 = vector.load %arg17[%c0_22, %c0_23, %c0_24] : memref<4x16x8xbf16, #tpu.memory_space<vmem>>, vector<1x16x8xbf16>
    %35 = vector.shape_cast %34 : vector<1x16x8xbf16> to vector<16x8xbf16>
    %cst_25 = arith.constant dense<0.000000e+00> : vector<8x8xf32>
    %36 = tpu.matmul %33, %35, %cst_25 {dimension_numbers = #tpu.dot_dimension_numbers<[1], [0], [0], [1], [0, 0, 1, 1], [], []>} : vector<8x16xbf16>, vector<16x8xbf16>, vector<8x8xf32> -> vector<8x8xf32>
    %37 = arith.truncf %36 : vector<8x8xf32> to vector<8x8xbf16>
    %c0_26 = arith.constant 0 : index
    %c0_27 = arith.constant 0 : index
    %c0_28 = arith.constant 0 : index
    %38 = vector.load %arg10[%c0_26, %c0_27, %c0_28] : memref<4x8x32xbf16, #tpu.memory_space<vmem>>, vector<1x8x32xbf16>
    %39 = vector.shape_cast %38 : vector<1x8x32xbf16> to vector<8x32xbf16>
    %cst_29 = arith.constant dense<0.000000e+00> : vector<8x32xf32>
    %40 = tpu.matmul %37, %39, %cst_29 {dimension_numbers = #tpu.dot_dimension_numbers<[1], [0], [0], [1], [0, 0, 1, 1], [], []>} : vector<8x8xbf16>, vector<8x32xbf16>, vector<8x32xf32> -> vector<8x32xf32>
    %c1 = arith.constant 1 : index
    %c0_30 = arith.constant 0 : index
    %c0_31 = arith.constant 0 : index
    %41 = vector.load %arg4[%c1, %c0_30, %c0_31] : memref<4x32x8xbf16, #tpu.memory_space<vmem>>, vector<1x32x8xbf16>
    %42 = vector.shape_cast %41 : vector<1x32x8xbf16> to vector<32x8xbf16>
    %cst_32 = arith.constant dense<0.000000e+00> : vector<8x8xf32>
    %43 = tpu.matmul %7, %42, %cst_32 {dimension_numbers = #tpu.dot_dimension_numbers<[1], [0], [0], [1], [0, 0, 1, 1], [], []>} : vector<8x32xbf16>, vector<32x8xbf16>, vector<8x8xf32> -> vector<8x8xf32>
    %c1_33 = arith.constant 1 : index
    %c0_34 = arith.constant 0 : index
    %c0_35 = arith.constant 0 : index
    %44 = vector.load %arg5[%c1_33, %c0_34, %c0_35] : memref<4x1x8xf32, #tpu.memory_space<vmem>>, vector<1x1x8xf32>
    %45 = vector.shape_cast %44 : vector<1x1x8xf32> to vector<1x8xf32>
    %46 = vector.broadcast %45 : vector<1x8xf32> to vector<8x8xf32>
    %47 = arith.addf %43, %46 : vector<8x8xf32>
    %48 = arith.truncf %47 : vector<8x8xf32> to vector<8x8xbf16>
    %c1_36 = arith.constant 1 : index
    %c0_37 = arith.constant 0 : index
    %c0_38 = arith.constant 0 : index
    %49 = vector.load %arg16[%c1_36, %c0_37, %c0_38] : memref<4x16x8xbf16, #tpu.memory_space<vmem>>, vector<1x16x8xbf16>
    %50 = vector.shape_cast %49 : vector<1x16x8xbf16> to vector<16x8xbf16>
    %cst_39 = arith.constant dense<0.000000e+00> : vector<8x16xf32>
    %51 = tpu.matmul %48, %50, %cst_39 {dimension_numbers = #tpu.dot_dimension_numbers<[1], [1], [0], [0], [0, 0, 1, 0], [], []>} : vector<8x8xbf16>, vector<16x8xbf16>, vector<8x16xf32> -> vector<8x16xf32>
    %cst_40 = arith.constant dense<0xFF800000> : vector<8xf32>
    %52 = vector.multi_reduction <maximumf>, %51, %cst_40 [1] : vector<8x16xf32> to vector<8xf32>
    %53 = vector.shape_cast %52 : vector<8xf32> to vector<8x1xf32>
    %54 = vector.broadcast %53 : vector<8x1xf32> to vector<8x16xf32>
    %55 = arith.subf %51, %54 : vector<8x16xf32>
    %56 = math.exp %55 : vector<8x16xf32>
    %cst_41 = arith.constant dense<0.000000e+00> : vector<8xf32>
    %57 = vector.multi_reduction <add>, %56, %cst_41 [1] : vector<8x16xf32> to vector<8xf32>
    %58 = vector.shape_cast %57 : vector<8xf32> to vector<8x1xf32>
    %59 = tpu.reciprocal %58 {approx = true} : vector<8x1xf32> -> vector<8x1xf32>
    %60 = vector.broadcast %59 : vector<8x1xf32> to vector<8x16xf32>
    %61 = arith.mulf %56, %60 : vector<8x16xf32>
    %62 = arith.truncf %61 : vector<8x16xf32> to vector<8x16xbf16>
    %c0_42 = arith.constant 0 : index
    %c1_43 = arith.constant 1 : index
    %c0_44 = arith.constant 0 : index
    %c0_45 = arith.constant 0 : index
    %63 = vector.load %arg15[%c0_42, %c1_43, %c0_44, %c0_45] : memref<1x4x8x16xbf16, #tpu.memory_space<vmem>>, vector<1x1x8x16xbf16>
    %64 = vector.shape_cast %63 : vector<1x1x8x16xbf16> to vector<8x16xbf16>
    %65 = vector.shape_cast %62 : vector<8x16xbf16> to vector<1x1x8x16xbf16>
    tpu.vector_store %arg15[%c0_42, %c1_43, %c0_44, %c0_45], %65 {strides = array<i32>} : memref<1x4x8x16xbf16, #tpu.memory_space<vmem>>, vector<1x1x8x16xbf16>,
    %66 = arith.truncf %61 : vector<8x16xf32> to vector<8x16xbf16>
    %c1_46 = arith.constant 1 : index
    %c0_47 = arith.constant 0 : index
    %c0_48 = arith.constant 0 : index
    %67 = vector.load %arg17[%c1_46, %c0_47, %c0_48] : memref<4x16x8xbf16, #tpu.memory_space<vmem>>, vector<1x16x8xbf16>
    %68 = vector.shape_cast %67 : vector<1x16x8xbf16> to vector<16x8xbf16>
    %cst_49 = arith.constant dense<0.000000e+00> : vector<8x8xf32>
    %69 = tpu.matmul %66, %68, %cst_49 {dimension_numbers = #tpu.dot_dimension_numbers<[1], [0], [0], [1], [0, 0, 1, 1], [], []>} : vector<8x16xbf16>, vector<16x8xbf16>, vector<8x8xf32> -> vector<8x8xf32>
    %70 = arith.truncf %69 : vector<8x8xf32> to vector<8x8xbf16>
    %c1_50 = arith.constant 1 : index
    %c0_51 = arith.constant 0 : index
    %c0_52 = arith.constant 0 : index
    %71 = vector.load %arg10[%c1_50, %c0_51, %c0_52] : memref<4x8x32xbf16, #tpu.memory_space<vmem>>, vector<1x8x32xbf16>
    %72 = vector.shape_cast %71 : vector<1x8x32xbf16> to vector<8x32xbf16>
    %cst_53 = arith.constant dense<0.000000e+00> : vector<8x32xf32>
    %73 = tpu.matmul %70, %72, %cst_53 {dimension_numbers = #tpu.dot_dimension_numbers<[1], [0], [0], [1], [0, 0, 1, 1], [], []>} : vector<8x8xbf16>, vector<8x32xbf16>, vector<8x32xf32> -> vector<8x32xf32>
    %74 = arith.addf %40, %73 : vector<8x32xf32>
    %c2 = arith.constant 2 : index
    %c0_54 = arith.constant 0 : index
    %c0_55 = arith.constant 0 : index
    %75 = vector.load %arg4[%c2, %c0_54, %c0_55] : memref<4x32x8xbf16, #tpu.memory_space<vmem>>, vector<1x32x8xbf16>
    %76 = vector.shape_cast %75 : vector<1x32x8xbf16> to vector<32x8xbf16>
    %cst_56 = arith.constant dense<0.000000e+00> : vector<8x8xf32>
    %77 = tpu.matmul %7, %76, %cst_56 {dimension_numbers = #tpu.dot_dimension_numbers<[1], [0], [0], [1], [0, 0, 1, 1], [], []>} : vector<8x32xbf16>, vector<32x8xbf16>, vector<8x8xf32> -> vector<8x8xf32>
    %c2_57 = arith.constant 2 : index
    %c0_58 = arith.constant 0 : index
    %c0_59 = arith.constant 0 : index
    %78 = vector.load %arg5[%c2_57, %c0_58, %c0_59] : memref<4x1x8xf32, #tpu.memory_space<vmem>>, vector<1x1x8xf32>
    %79 = vector.shape_cast %78 : vector<1x1x8xf32> to vector<1x8xf32>
    %80 = vector.broadcast %79 : vector<1x8xf32> to vector<8x8xf32>
    %81 = arith.addf %77, %80 : vector<8x8xf32>
    %82 = arith.truncf %81 : vector<8x8xf32> to vector<8x8xbf16>
    %c2_60 = arith.constant 2 : index
    %c0_61 = arith.constant 0 : index
    %c0_62 = arith.constant 0 : index
    %83 = vector.load %arg16[%c2_60, %c0_61, %c0_62] : memref<4x16x8xbf16, #tpu.memory_space<vmem>>, vector<1x16x8xbf16>
    %84 = vector.shape_cast %83 : vector<1x16x8xbf16> to vector<16x8xbf16>
    %cst_63 = arith.constant dense<0.000000e+00> : vector<8x16xf32>
    %85 = tpu.matmul %82, %84, %cst_63 {dimension_numbers = #tpu.dot_dimension_numbers<[1], [1], [0], [0], [0, 0, 1, 0], [], []>} : vector<8x8xbf16>, vector<16x8xbf16>, vector<8x16xf32> -> vector<8x16xf32>
    %cst_64 = arith.constant dense<0xFF800000> : vector<8xf32>
    %86 = vector.multi_reduction <maximumf>, %85, %cst_64 [1] : vector<8x16xf32> to vector<8xf32>
    %87 = vector.shape_cast %86 : vector<8xf32> to vector<8x1xf32>
    %88 = vector.broadcast %87 : vector<8x1xf32> to vector<8x16xf32>
    %89 = arith.subf %85, %88 : vector<8x16xf32>
    %90 = math.exp %89 : vector<8x16xf32>
    %cst_65 = arith.constant dense<0.000000e+00> : vector<8xf32>
    %91 = vector.multi_reduction <add>, %90, %cst_65 [1] : vector<8x16xf32> to vector<8xf32>
    %92 = vector.shape_cast %91 : vector<8xf32> to vector<8x1xf32>
    %93 = tpu.reciprocal %92 {approx = true} : vector<8x1xf32> -> vector<8x1xf32>
    %94 = vector.broadcast %93 : vector<8x1xf32> to vector<8x16xf32>
    %95 = arith.mulf %90, %94 : vector<8x16xf32>
    %96 = arith.truncf %95 : vector<8x16xf32> to vector<8x16xbf16>
    %c0_66 = arith.constant 0 : index
    %c2_67 = arith.constant 2 : index
    %c0_68 = arith.constant 0 : index
    %c0_69 = arith.constant 0 : index
    %97 = vector.load %arg15[%c0_66, %c2_67, %c0_68, %c0_69] : memref<1x4x8x16xbf16, #tpu.memory_space<vmem>>, vector<1x1x8x16xbf16>
    %98 = vector.shape_cast %97 : vector<1x1x8x16xbf16> to vector<8x16xbf16>
    %99 = vector.shape_cast %96 : vector<8x16xbf16> to vector<1x1x8x16xbf16>
    tpu.vector_store %arg15[%c0_66, %c2_67, %c0_68, %c0_69], %99 {strides = array<i32>} : memref<1x4x8x16xbf16, #tpu.memory_space<vmem>>, vector<1x1x8x16xbf16>,
    %100 = arith.truncf %95 : vector<8x16xf32> to vector<8x16xbf16>
    %c2_70 = arith.constant 2 : index
    %c0_71 = arith.constant 0 : index
    %c0_72 = arith.constant 0 : index
    %101 = vector.load %arg17[%c2_70, %c0_71, %c0_72] : memref<4x16x8xbf16, #tpu.memory_space<vmem>>, vector<1x16x8xbf16>
    %102 = vector.shape_cast %101 : vector<1x16x8xbf16> to vector<16x8xbf16>
    %cst_73 = arith.constant dense<0.000000e+00> : vector<8x8xf32>
    %103 = tpu.matmul %100, %102, %cst_73 {dimension_numbers = #tpu.dot_dimension_numbers<[1], [0], [0], [1], [0, 0, 1, 1], [], []>} : vector<8x16xbf16>, vector<16x8xbf16>, vector<8x8xf32> -> vector<8x8xf32>
    %104 = arith.truncf %103 : vector<8x8xf32> to vector<8x8xbf16>
    %c2_74 = arith.constant 2 : index
    %c0_75 = arith.constant 0 : index
    %c0_76 = arith.constant 0 : index
    %105 = vector.load %arg10[%c2_74, %c0_75, %c0_76] : memref<4x8x32xbf16, #tpu.memory_space<vmem>>, vector<1x8x32xbf16>
    %106 = vector.shape_cast %105 : vector<1x8x32xbf16> to vector<8x32xbf16>
    %cst_77 = arith.constant dense<0.000000e+00> : vector<8x32xf32>
    %107 = tpu.matmul %104, %106, %cst_77 {dimension_numbers = #tpu.dot_dimension_numbers<[1], [0], [0], [1], [0, 0, 1, 1], [], []>} : vector<8x8xbf16>, vector<8x32xbf16>, vector<8x32xf32> -> vector<8x32xf32>
    %108 = arith.addf %74, %107 : vector<8x32xf32>
    %c3 = arith.constant 3 : index
    %c0_78 = arith.constant 0 : index
    %c0_79 = arith.constant 0 : index
    %109 = vector.load %arg4[%c3, %c0_78, %c0_79] : memref<4x32x8xbf16, #tpu.memory_space<vmem>>, vector<1x32x8xbf16>
    %110 = vector.shape_cast %109 : vector<1x32x8xbf16> to vector<32x8xbf16>
    %cst_80 = arith.constant dense<0.000000e+00> : vector<8x8xf32>
    %111 = tpu.matmul %7, %110, %cst_80 {dimension_numbers = #tpu.dot_dimension_numbers<[1], [0], [0], [1], [0, 0, 1, 1], [], []>} : vector<8x32xbf16>, vector<32x8xbf16>, vector<8x8xf32> -> vector<8x8xf32>
    %c3_81 = arith.constant 3 : index
    %c0_82 = arith.constant 0 : index
    %c0_83 = arith.constant 0 : index
    %112 = vector.load %arg5[%c3_81, %c0_82, %c0_83] : memref<4x1x8xf32, #tpu.memory_space<vmem>>, vector<1x1x8xf32>
    %113 = vector.shape_cast %112 : vector<1x1x8xf32> to vector<1x8xf32>
    %114 = vector.broadcast %113 : vector<1x8xf32> to vector<8x8xf32>
    %115 = arith.addf %111, %114 : vector<8x8xf32>
    %116 = arith.truncf %115 : vector<8x8xf32> to vector<8x8xbf16>
    %c3_84 = arith.constant 3 : index
    %c0_85 = arith.constant 0 : index
    %c0_86 = arith.constant 0 : index
    %117 = vector.load %arg16[%c3_84, %c0_85, %c0_86] : memref<4x16x8xbf16, #tpu.memory_space<vmem>>, vector<1x16x8xbf16>
    %118 = vector.shape_cast %117 : vector<1x16x8xbf16> to vector<16x8xbf16>
    %cst_87 = arith.constant dense<0.000000e+00> : vector<8x16xf32>
    %119 = tpu.matmul %116, %118, %cst_87 {dimension_numbers = #tpu.dot_dimension_numbers<[1], [1], [0], [0], [0, 0, 1, 0], [], []>} : vector<8x8xbf16>, vector<16x8xbf16>, vector<8x16xf32> -> vector<8x16xf32>
    %cst_88 = arith.constant dense<0xFF800000> : vector<8xf32>
    %120 = vector.multi_reduction <maximumf>, %119, %cst_88 [1] : vector<8x16xf32> to vector<8xf32>
    %121 = vector.shape_cast %120 : vector<8xf32> to vector<8x1xf32>
    %122 = vector.broadcast %121 : vector<8x1xf32> to vector<8x16xf32>
    %123 = arith.subf %119, %122 : vector<8x16xf32>
    %124 = math.exp %123 : vector<8x16xf32>
    %cst_89 = arith.constant dense<0.000000e+00> : vector<8xf32>
    %125 = vector.multi_reduction <add>, %124, %cst_89 [1] : vector<8x16xf32> to vector<8xf32>
    %126 = vector.shape_cast %125 : vector<8xf32> to vector<8x1xf32>
    %127 = tpu.reciprocal %126 {approx = true} : vector<8x1xf32> -> vector<8x1xf32>
    %128 = vector.broadcast %127 : vector<8x1xf32> to vector<8x16xf32>
    %129 = arith.mulf %124, %128 : vector<8x16xf32>
    %130 = arith.truncf %129 : vector<8x16xf32> to vector<8x16xbf16>
    %c0_90 = arith.constant 0 : index
    %c3_91 = arith.constant 3 : index
    %c0_92 = arith.constant 0 : index
    %c0_93 = arith.constant 0 : index
    %131 = vector.load %arg15[%c0_90, %c3_91, %c0_92, %c0_93] : memref<1x4x8x16xbf16, #tpu.memory_space<vmem>>, vector<1x1x8x16xbf16>
    %132 = vector.shape_cast %131 : vector<1x1x8x16xbf16> to vector<8x16xbf16>
    %133 = vector.shape_cast %130 : vector<8x16xbf16> to vector<1x1x8x16xbf16>
    tpu.vector_store %arg15[%c0_90, %c3_91, %c0_92, %c0_93], %133 {strides = array<i32>} : memref<1x4x8x16xbf16, #tpu.memory_space<vmem>>, vector<1x1x8x16xbf16>,
    %134 = arith.truncf %129 : vector<8x16xf32> to vector<8x16xbf16>
    %c3_94 = arith.constant 3 : index
    %c0_95 = arith.constant 0 : index
    %c0_96 = arith.constant 0 : index
    %135 = vector.load %arg17[%c3_94, %c0_95, %c0_96] : memref<4x16x8xbf16, #tpu.memory_space<vmem>>, vector<1x16x8xbf16>
    %136 = vector.shape_cast %135 : vector<1x16x8xbf16> to vector<16x8xbf16>
    %cst_97 = arith.constant dense<0.000000e+00> : vector<8x8xf32>
    %137 = tpu.matmul %134, %136, %cst_97 {dimension_numbers = #tpu.dot_dimension_numbers<[1], [0], [0], [1], [0, 0, 1, 1], [], []>} : vector<8x16xbf16>, vector<16x8xbf16>, vector<8x8xf32> -> vector<8x8xf32>
    %138 = arith.truncf %137 : vector<8x8xf32> to vector<8x8xbf16>
    %c3_98 = arith.constant 3 : index
    %c0_99 = arith.constant 0 : index
    %c0_100 = arith.constant 0 : index
    %139 = vector.load %arg10[%c3_98, %c0_99, %c0_100] : memref<4x8x32xbf16, #tpu.memory_space<vmem>>, vector<1x8x32xbf16>
    %140 = vector.shape_cast %139 : vector<1x8x32xbf16> to vector<8x32xbf16>
    %cst_101 = arith.constant dense<0.000000e+00> : vector<8x32xf32>
    %141 = tpu.matmul %138, %140, %cst_101 {dimension_numbers = #tpu.dot_dimension_numbers<[1], [0], [0], [1], [0, 0, 1, 1], [], []>} : vector<8x8xbf16>, vector<8x32xbf16>, vector<8x32xf32> -> vector<8x32xf32>
    %142 = arith.addf %108, %141 : vector<8x32xf32>
    %143 = arith.addf %4, %142 : vector<8x32xf32>
    %c0_102 = arith.constant 0 : index
    %c0_103 = arith.constant 0 : index
    %144 = vector.load %arg11[%c0_102, %c0_103] : memref<1x32xf32, #tpu.memory_space<vmem>>, vector<1x32xf32>
    %145 = vector.broadcast %144 : vector<1x32xf32> to vector<8x32xf32>
    %146 = arith.addf %143, %145 : vector<8x32xf32>
    %cst_104 = arith.constant dense<0.000000e+00> : vector<8xf32>
    %147 = vector.multi_reduction <add>, %146, %cst_104 [1] : vector<8x32xf32> to vector<8xf32>
    %148 = vector.shape_cast %147 : vector<8xf32> to vector<8x1xf32>
    %cst_105 = arith.constant 3.200000e+01 : f32
    %149 = vector.broadcast %cst_105 : f32 to vector<8x1xf32>
    %150 = arith.divf %148, %149 : vector<8x1xf32>
    %151 = vector.broadcast %150 : vector<8x1xf32> to vector<8x32xf32>
    %152 = arith.subf %146, %151 : vector<8x32xf32>
    %153 = arith.mulf %152, %152 : vector<8x32xf32>
    %cst_106 = arith.constant dense<0.000000e+00> : vector<8xf32>
    %154 = vector.multi_reduction <add>, %153, %cst_106 [1] : vector<8x32xf32> to vector<8xf32>
    %155 = vector.shape_cast %154 : vector<8xf32> to vector<8x1xf32>
    %cst_107 = arith.constant 3.200000e+01 : f32
    %156 = vector.broadcast %cst_107 : f32 to vector<8x1xf32>
    %157 = arith.divf %155, %156 : vector<8x1xf32>
    %cst_108 = arith.constant 9.99999974E-6 : f32
    %158 = vector.broadcast %cst_108 : f32 to vector<8x1xf32>
    %159 = arith.addf %157, %158 : vector<8x1xf32>
    %160 = math.rsqrt %159 : vector<8x1xf32>
    %161 = vector.broadcast %160 : vector<8x1xf32> to vector<8x32xf32>
    %162 = arith.mulf %152, %161 : vector<8x32xf32>
    %c0_109 = arith.constant 0 : index
    %c0_110 = arith.constant 0 : index
    %163 = vector.load %arg12[%c0_109, %c0_110] : memref<1x32xf32, #tpu.memory_space<vmem>>, vector<1x32xf32>
    %164 = vector.broadcast %163 : vector<1x32xf32> to vector<8x32xf32>
    %165 = arith.mulf %162, %164 : vector<8x32xf32>
    %c0_111 = arith.constant 0 : index
    %c0_112 = arith.constant 0 : index
    %166 = vector.load %arg13[%c0_111, %c0_112] : memref<1x32xf32, #tpu.memory_space<vmem>>, vector<1x32xf32>
    %167 = vector.broadcast %166 : vector<1x32xf32> to vector<8x32xf32>
    %168 = arith.addf %165, %167 : vector<8x32xf32>
    %c0_113 = arith.constant 0 : index
    %c0_114 = arith.constant 0 : index
    %c0_115 = arith.constant 0 : index
    %169 = vector.load %arg14[%c0_113, %c0_114, %c0_115] : memref<1x8x32xf32, #tpu.memory_space<vmem>>, vector<1x8x32xf32>
    %170 = vector.shape_cast %169 : vector<1x8x32xf32> to vector<8x32xf32>
    %171 = vector.shape_cast %168 : vector<8x32xf32> to vector<1x8x32xf32>
    tpu.vector_store %arg14[%c0_113, %c0_114, %c0_115], %171 {strides = array<i32>} : memref<1x8x32xf32, #tpu.memory_space<vmem>>, vector<1x8x32xf32>,
    return
  }
  func.func @transform_0(%arg0: i32, %arg1: i32) -> (i32, i32, i32) {
    %c0_i32 = arith.constant 0 : i32
    %c0_i32_0 = arith.constant 0 : i32
    return %arg0, %arg1, %c0_i32 : i32, i32, i32
  }
  func.func @transform_1(%arg0: i32, %arg1: i32) -> (i32, i32, i32) {
    %c0_i32 = arith.constant 0 : i32
    %c0_i32_0 = arith.constant 0 : i32
    %c0_i32_1 = arith.constant 0 : i32
    return %arg0, %c0_i32, %c0_i32_0 : i32, i32, i32
  }
  func.func @transform_2(%arg0: i32, %arg1: i32) -> (i32, i32, i32) {
    %c0_i32 = arith.constant 0 : i32
    %c0_i32_0 = arith.constant 0 : i32
    %c0_i32_1 = arith.constant 0 : i32
    %c0_i32_2 = arith.constant 0 : i32
    return %c0_i32, %c0_i32_0, %c0_i32_1 : i32, i32, i32
  }
  func.func @transform_3(%arg0: i32, %arg1: i32) -> (i32, i32, i32) {
    %c0_i32 = arith.constant 0 : i32
    %c0_i32_0 = arith.constant 0 : i32
    %c0_i32_1 = arith.constant 0 : i32
    %c0_i32_2 = arith.constant 0 : i32
    return %c0_i32, %c0_i32_0, %c0_i32_1 : i32, i32, i32
  }
  func.func @transform_4(%arg0: i32, %arg1: i32) -> (i32, i32, i32) {
    %c0_i32 = arith.constant 0 : i32
    %c0_i32_0 = arith.constant 0 : i32
    %c0_i32_1 = arith.constant 0 : i32
    %c0_i32_2 = arith.constant 0 : i32
    return %c0_i32, %c0_i32_0, %c0_i32_1 : i32, i32, i32
  }
  func.func @transform_5(%arg0: i32, %arg1: i32) -> (i32, i32, i32) {
    %c0_i32 = arith.constant 0 : i32
    %c0_i32_0 = arith.constant 0 : i32
    %c0_i32_1 = arith.constant 0 : i32
    %c0_i32_2 = arith.constant 0 : i32
    return %c0_i32, %c0_i32_0, %c0_i32_1 : i32, i32, i32
  }
  func.func @transform_6(%arg0: i32, %arg1: i32) -> (i32, i32, i32) {
    %c0_i32 = arith.constant 0 : i32
    %c0_i32_0 = arith.constant 0 : i32
    %c0_i32_1 = arith.constant 0 : i32
    %c0_i32_2 = arith.constant 0 : i32
    return %c0_i32, %c0_i32_0, %c0_i32_1 : i32, i32, i32
  }
  func.func @transform_7(%arg0: i32, %arg1: i32) -> (i32, i32, i32) {
    %c0_i32 = arith.constant 0 : i32
    %c0_i32_0 = arith.constant 0 : i32
    %c0_i32_1 = arith.constant 0 : i32
    %c0_i32_2 = arith.constant 0 : i32
    return %c0_i32, %c0_i32_0, %c0_i32_1 : i32, i32, i32
  }
  func.func @transform_8(%arg0: i32, %arg1: i32) -> (i32, i32, i32) {
    %c0_i32 = arith.constant 0 : i32
    %c0_i32_0 = arith.constant 0 : i32
    %c0_i32_1 = arith.constant 0 : i32
    %c0_i32_2 = arith.constant 0 : i32
    return %c0_i32, %c0_i32_0, %c0_i32_1 : i32, i32, i32
  }
  func.func @transform_9(%arg0: i32, %arg1: i32) -> (i32, i32) {
    %c0_i32 = arith.constant 0 : i32
    %c0_i32_0 = arith.constant 0 : i32
    %c0_i32_1 = arith.constant 0 : i32
    return %c0_i32, %c0_i32_0 : i32, i32
  }
  func.func @transform_10(%arg0: i32, %arg1: i32) -> (i32, i32) {
    %c0_i32 = arith.constant 0 : i32
    %c0_i32_0 = arith.constant 0 : i32
    %c0_i32_1 = arith.constant 0 : i32
    return %c0_i32, %c0_i32_0 : i32, i32
  }
  func.func @transform_11(%arg0: i32, %arg1: i32) -> (i32, i32) {
    %c0_i32 = arith.constant 0 : i32
    %c0_i32_0 = arith.constant 0 : i32
    %c0_i32_1 = arith.constant 0 : i32
    return %c0_i32, %c0_i32_0 : i32, i32
  }
  func.func @transform_12(%arg0: i32, %arg1: i32) -> (i32, i32, i32) {
    %c0_i32 = arith.constant 0 : i32
    %c0_i32_0 = arith.constant 0 : i32
    return %arg0, %arg1, %c0_i32 : i32, i32, i32
  }
  func.func @transform_13(%arg0: i32, %arg1: i32) -> (i32, i32, i32, i32) {
    %c0_i32 = arith.constant 0 : i32
    %c0_i32_0 = arith.constant 0 : i32
    %c0_i32_1 = arith.constant 0 : i32
    return %arg0, %c0_i32, %arg1, %c0_i32_0 : i32, i32, i32, i32
  }
}

</mosaic_0001>

<bundles_post_ra>
// kernel: tpu_custom_call.1
= control target key start
LH: loop header
LB: loop body
LE: loop exit
PB: predicated region body
PF: predicated region fallthrough
CT: control target
= control target key end

     0   :  { %s3304_s0 = inlined_call_operand.vmem [shape: f32[2,16,32], index: 0, kind: input, shape index: {}]   ;;  %s3305_s1 = inlined_call_operand.vmem [shape: bf16[2,16,32], index: 1, kind: input, shape index: {}]   ;;  %s3306_s2 = inlined_call_operand.vmem [shape: bf16[4,32,8], index: 2, kind: input, shape index: {}]   ;;  %s3307_s3 = inlined_call_operand.vmem [shape: f32[4,1,8], index: 3, kind: input, shape index: {}]   ;;  %s3308_s4 = inlined_call_operand.vmem [shape: bf16[4,32,8], index: 4, kind: input, shape index: {}]   ;;  %s3309_s5 = inlined_call_operand.vmem [shape: f32[4,1,8], index: 5, kind: input, shape index: {}]   ;;  %s3310_s6 = inlined_call_operand.vmem [shape: bf16[4,32,8], index: 6, kind: input, shape index: {}]   ;;  %s3311_s7 = inlined_call_operand.vmem [shape: f32[4,1,8], index: 7, kind: input, shape index: {}]   ;;  %s3312_s8 = inlined_call_operand.vmem [shape: bf16[4,8,32], index: 8, kind: input, shape index: {}]   ;;  %s3313_s9 = inlined_call_operand.vmem [shape: f32[1,32], index: 9, kind: input, shape index: {}]   ;;  %s3314_s10 = inlined_call_operand.vmem [shape: f32[1,32], index: 10, kind: input, shape index: {}]   ;;  %s3315_s11 = inlined_call_operand.vmem [shape: f32[1,32], index: 11, kind: input, shape index: {}]   ;;  %s3316_s12 = inlined_call_operand.hbm [shape: f32[2,16,32], index: 12, kind: output, shape index: {0}]   ;;  %s3317_s13 = inlined_call_operand.hbm [shape: bf16[2,4,16,16], index: 13, kind: output, shape index: {1}]  }
   0x1   :  { %3330 = sst [smem:[#allocation20_spill]] %s3314_s10 }
   0x2   :  { %3331 = sst [smem:[#allocation21_spill]] %s3315_s11 }
   0x3   :  { %3332 = sst [smem:[#allocation22_spill]] %s3316_s12 }
   0x4   :  { %3333 = sst [smem:[#allocation23_spill]] %s3317_s13 }
   0x5   :  { %19 = vsyncpa [#allocation5], 0 }
   0x6   :  { %21 = vsyncpa [#allocation5 + $0x1], 0 }
   0x7   :  { %22 = vsyncpa [#allocation7], 0 }
   0x8   :  { %24 = vsyncpa [#allocation7 + $0x1], 0  ;;  %s2853_s25 = smov 0   ;;  %s2855_s26 = smov 0  }
   0x9   :  { %s2857_s27 = smov 0   ;;  %s2859_s28 = smov 0  }
   0xa   :  { %s2861_s29 = smov 0   ;;  %s2863_s30 = smov 0  }
   0xb   :  { %s2865_s14 = smov 0   ;;  %s2867_s15 = smov 0  }
   0xc LB: > { %3334 = sst [smem:[#allocation10_spill]] %s2744_s25  ;;  %s2156_s16 = sadd.s32 4294967295, %s2772_s15   ;;  %s2772_s15 = sphi %s2867_s15, %s30_s15   ;;  %s2768_s14 = sphi %s2865_s14, %s3359_s14   ;;  %s2764_s30 = sphi %s2863_s30, %s3358_s30   ;;  %s2760_s29 = sphi %s2861_s29, %s3357_s29   ;;  %s2756_s28 = sphi %s2859_s28, %s3356_s28   ;;  %s2752_s27 = sphi %s2857_s27, %s3355_s27   ;;  %s2748_s26 = sphi %s2855_s26, %s3354_s26   ;;  %s2744_s25 = sphi %s2853_s25, %s3353_s25  }
   0xd   : > { %3335 = sst [smem:[#allocation11_spill]] %s2748_s26  ;;  %s2157_s17 = sadd.s32 4294967294, %s2772_s15  }
   0xe   : > { %3336 = sst [smem:[#allocation12_spill]] %s2752_s27  ;;  %s39_s18 = sadd.s32 1, %s2764_s30 }
   0xf   : > { %3337 = sst [smem:[#allocation13_spill]] %s2764_s30  ;;  %p40_p0 = scmp.ge.s32.totalorder %s39_s18, 2 }
  0x10   : > { %3338 = sst [smem:[#allocation14_spill]] %s2768_s14  ;;  %s42_s19 = sadd.s32 1, %s2768_s14 }
  0x11   : > { %3339 = sst [smem:[#allocation15_spill]] %s2772_s15  ;;  %p325_p1 = scmp.ne.s32.totalorder %s2752_s27, %s2748_s26 }
  0x12   : > { %p326_p2 = scmp.eq.s32.totalorder %s2156_s16, 3  ;;  %s3361_s18 = smov (%p40_p0, %s39_s18), 0 }
  0x13   : > { %3340 = sst [smem:[#allocation16_spill]] %s3361_s18  ;;  %s3363_s19 = smov (!%p40_p0, %s42_s19), %s2768_s14 }
  0x14   : > { %s311_s20 = ssub.s32 %s2764_s30, %s3361_s18  ;;  %p2904_p3 = por %p326_p2, %p325_p1 }
  0x15   : > { %p44_p4 = scmp.ge.s32.totalorder %s3363_s19, 2  ;;  %p331_p5 = scmp.ne.s32.totalorder %s2748_s26, %s2744_s25 }
  0x16   : > { %p332_p6 = scmp.eq.s32.totalorder %s2157_s17, 3  ;;  %p2160_p7 = scmp.ge.s32.totalorder %s2772_s15, 1 }
  0x17   : > { %s3365_s19 = smov (%p44_p4, %s3363_s19), 0  ;;  %p427_p9 = scmp.lt.s32.totalorder %s2772_s15, 5 }
  0x18   : > { %3342 = sst [smem:[#allocation17_spill]] %s3365_s19  ;;  %p2913_p8 = por %p332_p6, %p331_p5 }
  0x19   : > { %s310_s23 = ssub.s32 %s2768_s14, %s3365_s19  ;;  %s315_s24 = sadd.s32 1, %s2752_s27 }
  0x1a   : > { %s3343_s22 = scalar_select %p2913_p8, 1, 0 }
  0x1b   : > { %s312_s16 = sor.u32 %s311_s20, %s310_s23  ;;  %p428_p10 = pnand %p2160_p7, %p427_p9 }
  0x1c   : > { %3344 = sst [smem:[#allocation18_spill]] %s3343_s22  ;;  %p313_p11 = scmp.eq.s32.totalorder %s312_s16, 0 }
  0x1d   : > { %431 = sbr.rel (%p428_p10) target bundleno = 4057 (0xfd9), region = 68  ;;  %s2925_s17 = sand.u32 (!%p428_p10), 1, %s2748_s26  }
  0x1e   : > { %s2922_s18 = scalar_select %p313_p11, %s2752_s27, %s315_s24  }
  0x1f   : > { %p484_p12 = scmp.lt.s32.totalorder (!%p428_p10), %s2760_s29, 1  ;;  %s2161_s30 = sshll.u32 (!%p428_p10), %s2925_s17, 3 }
  0x20   : > { %3345 = sst [smem:[#allocation19_spill]] %s2922_s18  ;;  %s2162_s22 = sshll.u32 (!%p428_p10), %s2925_s17, 4 }
  0x21   : > { %p486_p13 = scmp.lt.s32.totalorder (!%p428_p10), %s2756_s28, 1  ;;  %s2941_s11 = scalar_lea.vmem (!%p428_p10), [#allocation4], %s2161_s30 }
  0x22   : > { %s2943_s10 = scalar_lea.vmem (!%p428_p10), [#allocation6], %s2162_s22  ;;  %p2167_p0 = scmp.ne.s32.totalorder (!%p428_p10), %s2756_s28, 0 }
  0x24   : > { %s485_s19 = scalar_select %p484_p12, %s2760_s29, 1 }
  0x25   : > { %s487_s16 = scalar_select %p486_p13, %s2756_s28, 1 }
  0x26   : > { %s2163_s20 = sshll.u32 %s485_s19, 1  ;;  %s2291_s23 = sshll.u32 %s485_s19, 3  ;;  %v2603_v0 = vld [vmem:[%s3308_s4] sm:$0xff] (!%p2167_p0)   ;;  %v2774_v1 = vmov (!%p2167_p0), 0.0   ;;  %v2605_v3 = vld [vmem:[%s3308_s4 + $0x8] sm:$0xff] (!%p2167_p0)   ;;  %vm2775_vm0 = vmmov (!%p2167_p0), 0  }
  0x27   : > { %s496_s18 = scalar_lea.vmem %s3305_s1, %s2291_s23  ;;  %s489_s27 = sadd.s32 %s2163_s20, %s487_s16  ;;  %2352 = vmatprep.subr.bf16.mxu0 (!%p2167_p0), %v2774_v1  ;;  %2360 = vmatprep.subr.bf16.mxu1 (!%p2167_p0), %v2774_v1  ;;  %v2604_v2 = vld [vmem:[%s3310_s6] sm:$0xff] (!%p2167_p0)   ;;  %v2606_v4 = vld [vmem:[%s3310_s6 + $0x8] sm:$0xff] (!%p2167_p0)   ;;  %vm532_vm1 = vcmask (!%p2167_p0), 261120   ;;  %v2608_v6 = vld [vmem:[%s3308_s4 + $0x10] sm:$0xff] (!%p2167_p0)   ;;  %vm642_vm2 = vcmask (!%p2167_p0), 64512  }
  0x28   : > { %s2164_s25 = sshll.u32 %s489_s27, 3  ;;  %501 = sbr.rel (%p2167_p0) target bundleno = 291 (0x123), region = 72  ;;  %2353 = vmatpush3.bf16.msra.mxu0 (!%p2167_p0), %v2603_v0  ;;  %2356 = vmatprep.mubr.msk.bf16.mxu0 (!%p2167_p0), %vm2775_vm0, %v2774_v1  ;;  %v2607_v5 = vld [vmem:[%s496_s18] sm:$0xff] (!%p2167_p0)   ;;  %v2609_v7 = vld [vmem:[%s3310_s6 + $0x10] sm:$0xff] (!%p2167_p0)   ;;  %v2610_v8 = vld [vmem:[%s3308_s4 + $0x18] sm:$0xff] (!%p2167_p0)  }
  0x29   : > { %s2939_s26 = scalar_lea.vmem %s3304_s0, %s2164_s25  ;;  %2361 = vmatpush3.bf16.msra.mxu1 (!%p2167_p0), %v2604_v2  ;;  %2354 = vmatprep.subr.bf16.mxu0 (!%p2167_p0), %v2774_v1  ;;  %v2611_v9 = vld [vmem:[%s3310_s6 + $0x18] sm:$0xff] (!%p2167_p0)   ;;  %v2612_v10 = vld [vmem:[%s3308_s4 + $0x20] sm:$0xff] (!%p2167_p0)   ;;  %v2614_v12 = vld [vmem:[%s3308_s4 + $0x28] sm:$0xff] (!%p2167_p0)  }
  0x2a   : > { %2362 = vmatprep.subr.bf16.mxu1 (!%p2167_p0), %v2774_v1  ;;  %2364 = vmatprep.mubr.msk.bf16.mxu1 (!%p2167_p0), %vm2775_vm0, %v2774_v1  ;;  %v2613_v11 = vld [vmem:[%s3310_s6 + $0x20] sm:$0xff] (!%p2167_p0)   ;;  %v2615_v13 = vld [vmem:[%s3310_s6 + $0x28] sm:$0xff] (!%p2167_p0)   ;;  %v2616_v14 = vld [vmem:[%s3308_s4 + $0x30] sm:$0xff] (!%p2167_p0)  }
  0x2b   : > { %v2617_v15 = vld [vmem:[%s3310_s6 + $0x30] sm:$0xff] (!%p2167_p0)   ;;  %v2618_v16 = vld [vmem:[%s3308_s4 + $0x38] sm:$0xff] (!%p2167_p0)   ;;  %v2168_v18 = vld [vmem:[%s3309_s5] ss:$0 sm:$0xff] (!%p2167_p0) }
  0x2c   : > { %2355 = vmatpush3.bf16.msra.mxu0 (!%p2167_p0), %v2605_v3  ;;  %v2619_v17 = vld [vmem:[%s3310_s6 + $0x38] sm:$0xff] (!%p2167_p0)   ;;  %v2173_v20 = vld [vmem:[%s3311_s7] ss:$0 sm:$0xff] (!%p2167_p0)  ;;  %v2182_v34 = vld [vmem:[%s3309_s5 + $0x1] ss:$0 sm:$0xff] (!%p2167_p0) }
  0x2d   : > { %2363 = vmatpush3.bf16.msra.mxu1 (!%p2167_p0), %v2606_v4  ;;  %2368 = vmatprep.subr.bf16.mxu0 (!%p2167_p0), %v2774_v1  ;;  %v2191_v36 = vld [vmem:[%s3311_s7 + $0x1] ss:$0 sm:$0xff] (!%p2167_p0)  ;;  %v2200_v50 = vld [vmem:[%s3309_s5 + $0x2] ss:$0 sm:$0xff] (!%p2167_p0)  ;;  %v2218_v2 = vld [vmem:[%s3309_s5 + $0x3] ss:$0 sm:$0xff] (!%p2167_p0) }
  0x2e   : > { %2376 = vmatprep.subr.bf16.mxu1 (!%p2167_p0), %v2774_v1  ;;  %v2209_v52 = vld [vmem:[%s3311_s7 + $0x2] ss:$0 sm:$0xff] (!%p2167_p0)  ;;  %v2227_v4 = vld [vmem:[%s3311_s7 + $0x3] ss:$0 sm:$0xff] (!%p2167_p0) }
  0x2f   : > { %2357 = vmatmul.mubr.msk.bf16.vlgmr.msra.gmra.mrb[0].mxu0 %vm532_vm1, %v2607_v5 }
  0x30   : > { %2365 = vmatmul.mubr.msk.bf16.vlgmr.msra.gmra.mrb[0].mxu1 %vm532_vm1, %v2607_v5  ;;  %2369 = vmatpush3.bf16.msra.mxu0 %v2608_v6 }
  0x31   : > { %2377 = vmatpush3.bf16.msra.mxu1 %v2609_v7  ;;  %2370 = vmatprep.subr.bf16.mxu0 %v2774_v1 }
  0x32   : > { %2378 = vmatprep.subr.bf16.mxu1 %v2774_v1  ;;  %2372 = vmatprep.mubr.msk.bf16.mxu0 %vm2775_vm0, %v2774_v1 }
  0x33   : > { %2380 = vmatprep.mubr.msk.bf16.mxu1 %vm2775_vm0, %v2774_v1 }
  0x34   : > { %2371 = vmatpush3.bf16.msra.mxu0 %v2610_v8 }
  0x35   : > { %2379 = vmatpush3.bf16.msra.mxu1 %v2611_v9  ;;  %2384 = vmatprep.subr.bf16.mxu0 %v2774_v1 }
  0x36   : > { %2392 = vmatprep.subr.bf16.mxu1 %v2774_v1 }
  0x37   : > { %2373 = vmatmul.mubr.msk.bf16.vlgmr.msra.gmra.mrb[4].mxu0 %vm532_vm1, %v2607_v5 }
  0x38   : > { %2381 = vmatmul.mubr.msk.bf16.vlgmr.msra.gmra.mrb[4].mxu1 %vm532_vm1, %v2607_v5  ;;  %2385 = vmatpush3.bf16.msra.mxu0 %v2612_v10 }
  0x39   : > { %2393 = vmatpush3.bf16.msra.mxu1 %v2613_v11  ;;  %2386 = vmatprep.subr.bf16.mxu0 %v2774_v1 }
  0x3a   : > { %2394 = vmatprep.subr.bf16.mxu1 %v2774_v1  ;;  %2388 = vmatprep.mubr.msk.bf16.mxu0 %vm2775_vm0, %v2774_v1 }
  0x3b   : > { %2396 = vmatprep.mubr.msk.bf16.mxu1 %vm2775_vm0, %v2774_v1 }
  0x3c   : > { %2387 = vmatpush3.bf16.msra.mxu0 %v2614_v12 }
  0x3d   : > { %2395 = vmatpush3.bf16.msra.mxu1 %v2615_v13  ;;  %2400 = vmatprep.subr.bf16.mxu0 %v2774_v1 }
  0x3e   : > { %2408 = vmatprep.subr.bf16.mxu1 %v2774_v1 }
  0x3f   : > { %2389 = vmatmul.mubr.msk.bf16.vlgmr.msra.gmra.mrb[8].mxu0 %vm532_vm1, %v2607_v5 }
  0x40   : > { %2397 = vmatmul.mubr.msk.bf16.vlgmr.msra.gmra.mrb[8].mxu1 %vm532_vm1, %v2607_v5  ;;  %2401 = vmatpush3.bf16.msra.mxu0 %v2616_v14 }
  0x41   : > { %2409 = vmatpush3.bf16.msra.mxu1 %v2617_v15  ;;  %2402 = vmatprep.subr.bf16.mxu0 %v2774_v1 }
  0x42   : > { %2410 = vmatprep.subr.bf16.mxu1 %v2774_v1  ;;  %2404 = vmatprep.mubr.msk.bf16.mxu0 %vm2775_vm0, %v2774_v1 }
  0x43   : > { %2412 = vmatprep.mubr.msk.bf16.mxu1 %vm2775_vm0, %v2774_v1 }
  0x44   : > { %2403 = vmatpush3.bf16.msra.mxu0 %v2618_v16 }
  0x45   : > { %2411 = vmatpush3.bf16.msra.mxu1 %v2619_v17 }
  0x47   : > { %2405 = vmatmul.mubr.msk.bf16.vlgmr.msra.gmra.mrb[12].mxu0 %vm532_vm1, %v2607_v5 }
  0x48   : > { %2413 = vmatmul.mubr.msk.bf16.vlgmr.msra.gmra.mrb[12].mxu1 %vm532_vm1, %v2607_v5 }
 0x102   : > { %v570_v19 = vpop.f32.mrb[0].mxu0 }
 0x103   : > { %v634_v21 = vpop.f32.mrb[0].mxu1  ;;  %v2358_v22 = vpop.f32.mrb[1].mxu0  ;;  %v571_v25 = vadd.f32 %v2168_v18, %v570_v19 }
 0x104   : > { %v2366_v23 = vpop.f32.mrb[1].mxu1  ;;  %v573_v24 = vpop.f32.mrb[2].mxu0  ;;  %v635_v29 = vadd.f32 %v2173_v20, %v634_v21 }
 0x105   : > { %v574_v26 = vadd.f32 %v2168_v18, %v573_v24  ;;  %v637_v27 = vpop.f32.mrb[2].mxu1  ;;  %v2359_v28 = vpop.f32.mrb[3].mxu0 }
 0x106   : > { %v638_v30 = vadd.f32 %v2173_v20, %v637_v27  ;;  %v2367_v31 = vpop.f32.mrb[3].mxu1 }
 0x107   : > { %v641_v32 = vpack.c.bf16 %v574_v26, %v571_v25 }
 0x108   : > { %v644_v33 = vpack.c.bf16 %v638_v30, %v635_v29 }
 0x109   : > { %643 = vst.msk [vmem:[#allocation2] sm:$0xff] %vm642_vm2, %v641_v32 }
 0x10a   : > { %645 = vst.msk [vmem:[#allocation3] sm:$0xff] %vm642_vm2, %v644_v33  ;;  %v705_v35 = vpop.f32.mrb[4].mxu0 }
 0x10b   : > { %v771_v37 = vpop.f32.mrb[4].mxu1  ;;  %v2374_v38 = vpop.f32.mrb[5].mxu0  ;;  %v706_v41 = vadd.f32 %v2182_v34, %v705_v35 }
 0x10c   : > { %v2382_v39 = vpop.f32.mrb[5].mxu1  ;;  %v708_v40 = vpop.f32.mrb[6].mxu0  ;;  %v772_v45 = vadd.f32 %v2191_v36, %v771_v37 }
 0x10d   : > { %v709_v42 = vadd.f32 %v2182_v34, %v708_v40  ;;  %v774_v43 = vpop.f32.mrb[6].mxu1  ;;  %v2375_v44 = vpop.f32.mrb[7].mxu0 }
 0x10e   : > { %v775_v46 = vadd.f32 %v2191_v36, %v774_v43  ;;  %v2383_v47 = vpop.f32.mrb[7].mxu1 }
 0x10f   : > { %v778_v48 = vpack.c.bf16 %v709_v42, %v706_v41 }
 0x110   : > { %v781_v49 = vpack.c.bf16 %v775_v46, %v772_v45 }
 0x111   : > { %780 = vst.msk [vmem:[#allocation2 + $0x8] sm:$0xff] %vm642_vm2, %v778_v48 }
 0x112   : > { %783 = vst.msk [vmem:[#allocation3 + $0x8] sm:$0xff] %vm642_vm2, %v781_v49  ;;  %v843_v51 = vpop.f32.mrb[8].mxu0 }
 0x113   : > { %v909_v53 = vpop.f32.mrb[8].mxu1  ;;  %v2390_v54 = vpop.f32.mrb[9].mxu0  ;;  %v844_v57 = vadd.f32 %v2200_v50, %v843_v51 }
 0x114   : > { %v2398_v55 = vpop.f32.mrb[9].mxu1  ;;  %v846_v56 = vpop.f32.mrb[10].mxu0  ;;  %v910_v61 = vadd.f32 %v2209_v52, %v909_v53 }
 0x115   : > { %v847_v58 = vadd.f32 %v2200_v50, %v846_v56  ;;  %v912_v59 = vpop.f32.mrb[10].mxu1  ;;  %v2391_v60 = vpop.f32.mrb[11].mxu0 }
 0x116   : > { %v913_v62 = vadd.f32 %v2209_v52, %v912_v59  ;;  %v2399_v63 = vpop.f32.mrb[11].mxu1 }
 0x117   : > { %v916_v0 = vpack.c.bf16 %v847_v58, %v844_v57 }
 0x118   : > { %v919_v1 = vpack.c.bf16 %v913_v62, %v910_v61 }
 0x119   : > { %918 = vst.msk [vmem:[#allocation2 + $0x10] sm:$0xff] %vm642_vm2, %v916_v0 }
 0x11a   : > { %921 = vst.msk [vmem:[#allocation3 + $0x10] sm:$0xff] %vm642_vm2, %v919_v1  ;;  %v981_v3 = vpop.f32.mrb[12].mxu0 }
 0x11b   : > { %v1047_v5 = vpop.f32.mrb[12].mxu1  ;;  %v2406_v6 = vpop.f32.mrb[13].mxu0  ;;  %v982_v9 = vadd.f32 %v2218_v2, %v981_v3 }
 0x11c   : > { %v2414_v7 = vpop.f32.mrb[13].mxu1  ;;  %v984_v8 = vpop.f32.mrb[14].mxu0  ;;  %v1048_v13 = vadd.f32 %v2227_v4, %v1047_v5 }
 0x11d   : > { %v985_v10 = vadd.f32 %v2218_v2, %v984_v8  ;;  %v1050_v11 = vpop.f32.mrb[14].mxu1  ;;  %v2407_v12 = vpop.f32.mrb[15].mxu0 }
 0x11e   : > { %v1051_v14 = vadd.f32 %v2227_v4, %v1050_v11  ;;  %v2415_v15 = vpop.f32.mrb[15].mxu1 }
 0x11f   : > { %v1054_v16 = vpack.c.bf16 %v985_v10, %v982_v9 }
 0x120   : > { %v1057_v17 = vpack.c.bf16 %v1051_v14, %v1048_v13 }
 0x121   : > { %1056 = vst.msk [vmem:[#allocation2 + $0x18] sm:$0xff] %vm642_vm2, %v1054_v16 }
 0x122   : > { %1059 = vst.msk [vmem:[#allocation3 + $0x18] sm:$0xff] %vm642_vm2, %v1057_v17 }
 0x123 PF: > { %v2620_v18 = vld [vmem:[%s3306_s2] sm:$0xff]   ;;  %v2776_v19 = vmov 0.0   ;;  %v2621_v20 = vld [vmem:[%s3306_s2 + $0x8] sm:$0xff]   ;;  %vm2777_vm3 = vmmov 0   ;;  %vm1131_vm4 = vcmask 64512   ;;  %vm1085_vm5 = vcmask 261120  }
 0x124   : > { %2416 = vmatprep.subr.bf16.mxu0 %v2776_v19  ;;  %2424 = vmatprep.subr.bf16.mxu1 %v2776_v19  ;;  %v3053_v21 = vld [vmem:[%s2939_s26] sm:$0xff]  ;;  %v2622_v32 = vld [vmem:[%s3306_s2 + $0x10] sm:$0xff]   ;;  %v2623_v33 = vld [vmem:[%s3306_s2 + $0x18] sm:$0xff]   ;;  %vm1178_vm6 = vcmask 130048   ;;  %vm1191_vm7 = vcmask 125952   ;;  %vm1418_vm8 = vcmask 1043456  }
 0x125   : > { %2417 = vmatpush3.bf16.msra.mxu0 %v2620_v18  ;;  %2420 = vmatprep.mubr.msk.bf16.mxu0 %vm2777_vm3, %v2776_v19  ;;  %v1130_v22 = vld [vmem:[#allocation2] sm:$0xff]  ;;  %v3061_v24 = vpack.c.bf16 %v3053_v21, %v3053_v21  ;;  %v1306_v51 = vld [vmem:[#allocation2 + $0x8] sm:$0xff]  ;;  %s2287_s26 = sshll.u32 %s2760_s29, 3  ;;  %s2029_s16 = sshll.u32 %s2943_s10, 4  ;;  %s3210_s16 = int_to_ptr.vmem [resolvable:$true] %s2029_s16 }
 0x126   : > { %2418 = vmatprep.subr.bf16.mxu0 %v2776_v19  ;;  %v1136_v23 = vsel %vm1131_vm4, %v1130_v22, 0  ;;  %2426 = vmatprep.mubr.msk.bf16.mxu1 %vm2777_vm3, %v2776_v19  ;;  %v2231_v25 = vld [vmem:[%s3307_s3] ss:$0 sm:$0xff]  ;;  %v2242_v53 = vld [vmem:[%s3307_s3 + $0x1] ss:$0 sm:$0xff]  ;;  %v1311_v55 = vsel %vm1131_vm4, %v1306_v51, 0  ;;  %s2026_s20 = sadd.s32 %s2756_s28, %s2287_s26 }
 0x127   : > { %2425 = vmatpush3.bf16.xpose.msra.mxu1 %v1136_v23  ;;  %v1193_v44 = vld [vmem:[#allocation3] sm:$0xff]  ;;  %v1368_v8 = vld [vmem:[#allocation3 + $0x8] sm:$0xff]  ;;  %s2288_s23 = sshll.u32 %s2026_s20, 6  ;;  %s3346_s19 = sld [smem:[#allocation23_spill]] }
 0x128   : > { %2436 = vmatprep.subr.bf16.mxu1 %v2776_v19  ;;  %v2249_v9 = vld [vmem:[%s3312_s8 + $0x4] sm:$0xf]  ;;  %v1238_v13 = vld [vmem:[%s3312_s8] sm:$0xf]  ;;  %s2000_s14 = scalar_lea.sflag [#allocation7], %s2925_s17  ;;  %s2646_s12 = scalar_lea.vmem %s3210_s16, 256 }
 0x129   : > { %2419 = vmatpush3.bf16.msra.mxu0 %v2621_v20  ;;  %v1420_v10 = vsel %vm1418_vm8, %v2249_v9, 0  ;;  %v1466_v16 = vsel %vm1418_vm8, %v1238_v13, 0  ;;  %v2624_v20 = vld [vmem:[%s3306_s2 + $0x20] sm:$0xff]   ;;  %p2647_p1 = scmp.ne.s32.totalorder %s3210_s16, %s2646_s12  ;;  %s2778_s25 = smov [#allocation6]  }
 0x12a   : > { %2430 = vmatprep.subr.bf16.mxu0 %v2776_v19  ;;  %s2650_s30 = sshll.u32 %s2778_s25, 4  ;;  %s2651_s30 = int_to_ptr.vmem [resolvable:$false] %s2650_s30 }
 0x12b   : > { %p2648_p2 = pnand %p2647_p1, %p2904_p3  ;;  %p2653_p5 = scmp.lt.s32.totalorder %s3210_s16, %s2651_s30 }
 0x12c   : > { %2421 = vmatmul.mubr.msk.bf16.vlgmr.msra.gmra.mrb[0].mxu0 %vm1085_vm5, %v3061_v24 }
 0x12d   : > { %2432 = vmatprep.mubr.msk.bf16.mxu0 %vm2777_vm3, %v2776_v19  ;;  %2431 = vmatpush3.bf16.msra.mxu0 %v1193_v44  ;;  %s3208_s27 = scalar_lea.hbm %s3346_s19, %s2288_s23  ;;  %p2649_p4 = pneg %p2648_p2 }
 0x12e   : > { %2444 = vmatprep.subr.bf16.mxu0 %v2776_v19 }
 0x1ff   : > { %v1123_v26 = vpop.f32.mrb[0].mxu0 }
 0x200   : > { %v1124_v27 = vadd.f32 %v2231_v25, %v1123_v26  ;;  %v2422_v28 = vpop.f32.mrb[1].mxu0 }
 0x201   : > { %v1126_v29 = vpop.f32.mrb[2].mxu0 }
 0x202   : > { %v1129_v30 = vpack.c.bf16 %v1124_v27, %v1124_v27  ;;  %v2423_v31 = vpop.f32.mrb[3].mxu0  ;;  %v2625_v27 = vld [vmem:[%s3306_s2 + $0x28] sm:$0xff]  }
 0x204   : > { %2427 = vmatmul.mubr.msk.bf16.vlgmr.msra.gmra.mrb[0].mxu1 %vm1131_vm4, %v1129_v30 }
 0x205   : > { %2440 = vmatprep.mubr.msk.bf16.mxu1 %vm2777_vm3, %v2776_v19  ;;  %2437 = vmatpush3.bf16.msra.mxu1 %v2622_v32  ;;  %v1575_v32 = vld [vmem:[#allocation2 + $0x10] sm:$0xff] }
 0x206   : > { %2438 = vmatprep.subr.bf16.mxu1 %v2776_v19 }
 0x209   : > { %2439 = vmatpush3.bf16.msra.mxu1 %v2623_v33  ;;  %v1580_v33 = vsel %vm1131_vm4, %v1575_v32, 0  ;;  %v2278_v32 = vld [vmem:[%s3312_s8 + $0xc] sm:$0xf] }
 0x20a   : > { %2450 = vmatprep.subr.bf16.mxu1 %v2776_v19 }
 0x20c   : > { %2441 = vmatmul.mubr.msk.bf16.vlgmr.msra.gmra.mrb[4].mxu1 %vm1085_vm5, %v3061_v24 }
 0x20d   : > { %2452 = vmatprep.mubr.msk.bf16.mxu1 %vm2777_vm3, %v2776_v19  ;;  %2451 = vmatpush3.bf16.msra.mxu1 %v1368_v8 }
 0x20e   : > { %2462 = vmatprep.subr.bf16.mxu1 %v2776_v19 }
 0x2d7   : > { %v1172_v34 = vpop.f32.mrb[0].mxu1 }
 0x2d8   : > { %v2428_v35 = vpop.f32.mrb[1].mxu1  ;;  %v1179_v36 = vsel %vm1178_vm6, %v1172_v34, -inf }
 0x2d9   : > { %1180 = vmax.xlane.f32.xlu0 %v1179_v36  ;;  %v1175_v37 = vpop.f32.mrb[2].mxu1 }
 0x2da   : > { %v2429_v38 = vpop.f32.mrb[3].mxu1 }
 0x2df   : > { %v1298_v45 = vpop.f32.mrb[4].mxu1 }
 0x2e0   : > { %v2442_v46 = vpop.f32.mrb[5].mxu1  ;;  %v1299_v56 = vadd.f32 %v2242_v53, %v1298_v45 }
 0x2e1   : > { %v1301_v47 = vpop.f32.mrb[6].mxu1 }
 0x2e2   : > { %v2443_v48 = vpop.f32.mrb[7].mxu1  ;;  %v1304_v57 = vpack.c.bf16 %v1299_v56, %v1299_v56  ;;  %v1637_v56 = vld [vmem:[#allocation3 + $0x10] sm:$0xff] }
 0x366   : > { %v1181_v39 = vpop.xlane.xlu0 %1180 }
 0x367   : > { %v1182_v40 = vsub.f32 %v1172_v34, %v1181_v39  ;;  %v2257_v39 = vld [vmem:[%s3307_s3 + $0x2] ss:$0 sm:$0xff] }
 0x369   : > { %v1183_v41 = vmul.f32 1.442695, %v1182_v40 }
 0x36b   : > { %2628 = vpow2.f32 %v1183_v41 }
 0x375   : > { %v2629_v42 = vpop.eup %2628 }
 0x376   : > { %v1185_v43 = vsel %vm1178_vm6, %v2629_v42, 0.0 }
 0x377   : > { %1186 = vadd.xlane.f32.xlu0 %v1185_v43 }
 0x404   : > { %v1187_v49 = vpop.xlane.xlu0 %1186 }
 0x405   : > { %2630 = vrcp.f32 %v1187_v49 }
 0x40f   : > { %v2631_v50 = vpop.eup %2630 }
 0x410   : > { %v1189_v52 = vmul.f32 %v2631_v50, %v2629_v42 }
 0x412   : > { %v1190_v54 = vpack.c.bf16 %v1189_v52, %v1189_v52 }
 0x414   : > { %1192 = vst.msk [vmem:[%s2943_s10] sm:$0xf] %vm1191_vm7, %v1190_v54  ;;  %2433 = vmatmul.mubr.msk.bf16.vlgmr.msra.gmra.mrb[4].mxu0 %vm1178_vm6, %v1190_v54 }
 0x415   : > { %2445 = vmatpush3.bf16.xpose.msra.mxu0 %v1311_v55  ;;  %2446 = vmatprep.mubr.msk.bf16.mxu0 %vm2777_vm3, %v2776_v19 }
 0x416   : > { %2456 = vmatprep.subr.bf16.mxu0 %v2776_v19 }
 0x41c   : > { %2447 = vmatmul.mubr.msk.bf16.vlgmr.msra.gmra.mrb[8].mxu0 %vm1131_vm4, %v1304_v57  ;;  %v2264_v57 = vld [vmem:[%s3312_s8 + $0x8] sm:$0xf] }
 0x41d   : > { %2458 = vmatprep.mubr.msk.bf16.mxu0 %vm2777_vm3, %v2776_v19  ;;  %2457 = vmatpush3.bf16.msra.mxu0 %v1420_v10 }
 0x41e   : > { %2468 = vmatprep.subr.bf16.mxu0 %v2776_v19 }
 0x4e7   : > { %v1231_v58 = vpop.f32.mrb[4].mxu0 }
 0x4e8   : > { %v2434_v59 = vpop.f32.mrb[5].mxu0  ;;  %v1237_v17 = vpack.c.bf16 %v1231_v58, %v1231_v58  ;;  %v1688_v58 = vsel %vm1418_vm8, %v2264_v57, 0 }
 0x4e9   : > { %v1234_v60 = vpop.f32.mrb[6].mxu0 }
 0x4ea   : > { %v2435_v61 = vpop.f32.mrb[7].mxu0 }
 0x4ef   : > { %v1347_v62 = vpop.f32.mrb[8].mxu0 }
 0x4f0   : > { %v2448_v63 = vpop.f32.mrb[9].mxu0  ;;  %v1353_v0 = vsel %vm1178_vm6, %v1347_v62, -inf }
 0x4f1   : > { %1354 = vmax.xlane.f32.xlu1 %v1353_v0  ;;  %v1350_v1 = vpop.f32.mrb[10].mxu0  ;;  %v2627_v0 = vld [vmem:[%s3306_s2 + $0x38] sm:$0xff]  }
 0x4f2   : > { %v2449_v2 = vpop.f32.mrb[11].mxu0  ;;  %v1798_v1 = vld [vmem:[#allocation2 + $0x18] sm:$0xff] }
 0x57e   : > { %v1355_v3 = vpop.xlane.xlu1 %1354 }
 0x57f   : > { %v1356_v4 = vsub.f32 %v1347_v62, %v1355_v3  ;;  %v2626_v62 = vld [vmem:[%s3306_s2 + $0x30] sm:$0xff]  }
 0x581   : > { %v1357_v5 = vmul.f32 1.442695, %v1356_v4 }
 0x583   : > { %2632 = vpow2.f32 %v1357_v5  ;;  %v1803_v5 = vsel %vm1131_vm4, %v1798_v1, 0 }
 0x58d   : > { %v2633_v6 = vpop.eup %2632 }
 0x58e   : > { %v1359_v7 = vsel %vm1178_vm6, %v2633_v6, 0.0 }
 0x58f   : > { %1360 = vadd.xlane.f32.xlu1 %v1359_v7 }
 0x61c   : > { %v1361_v11 = vpop.xlane.xlu1 %1360 }
 0x61d   : > { %2634 = vrcp.f32 %v1361_v11 }
 0x627   : > { %v2635_v12 = vpop.eup %2634 }
 0x628   : > { %v1363_v14 = vmul.f32 %v2635_v12, %v2633_v6 }
 0x62a   : > { %v1364_v15 = vpack.c.bf16 %v1363_v14, %v1363_v14 }
 0x62c   : > { %2247 = vst.msk [vmem:[%s2943_s10 + $0x4] sm:$0xf] %vm1191_vm7, %v1364_v15  ;;  %2453 = vmatmul.mubr.msk.bf16.vlgmr.msra.gmra.mrb[8].mxu1 %vm1178_vm6, %v1364_v15 }
 0x62d   : > { %2463 = vmatpush3.bf16.msra.mxu1 %v1466_v16  ;;  %2464 = vmatprep.mubr.msk.bf16.mxu1 %vm2777_vm3, %v2776_v19 }
 0x62e   : > { %2476 = vmatprep.subr.bf16.mxu1 %v2776_v19 }
 0x634   : > { %2465 = vmatmul.mubr.msk.bf16.vlgmr.msra.gmra.mrb[12].mxu1 %vm1131_vm4, %v1237_v17 }
 0x635   : > { %2478 = vmatprep.mubr.msk.bf16.mxu1 %vm2777_vm3, %v2776_v19 }
 0x636   : > { %2477 = vmatpush3.bf16.xpose.msra.mxu1 %v1580_v33  ;;  %v1911_v33 = vsel %vm1418_vm8, %v2278_v32, 0 }
 0x637   : > { %2488 = vmatprep.subr.bf16.mxu1 %v2776_v19 }
 0x6ff   : > { %v1406_v18 = vpop.f32.mrb[8].mxu1 }
 0x700   : > { %v1412_v22 = vpack.c.bf16 %v1406_v18, %v1406_v18  ;;  %v2454_v23 = vpop.f32.mrb[9].mxu1 }
 0x701   : > { %v1409_v25 = vpop.f32.mrb[10].mxu1 }
 0x702   : > { %v2455_v26 = vpop.f32.mrb[11].mxu1  ;;  %2459 = vmatmul.mubr.msk.bf16.vlgmr.msra.gmra.mrb[12].mxu0 %vm1131_vm4, %v1412_v22 }
 0x703   : > { %2469 = vmatpush3.bf16.msra.mxu0 %v2624_v20  ;;  %2472 = vmatprep.mubr.msk.bf16.mxu0 %vm2777_vm3, %v2776_v19 }
 0x704   : > { %2470 = vmatprep.subr.bf16.mxu0 %v2776_v19 }
 0x707   : > { %2471 = vmatpush3.bf16.msra.mxu0 %v2625_v27  ;;  %v1502_v28 = vpop.f32.mrb[12].mxu1 }
 0x708   : > { %v2466_v29 = vpop.f32.mrb[13].mxu1  ;;  %2482 = vmatprep.subr.bf16.mxu0 %v2776_v19 }
 0x709   : > { %v1505_v30 = vpop.f32.mrb[14].mxu1 }
 0x70a   : > { %v2467_v31 = vpop.f32.mrb[15].mxu1  ;;  %2473 = vmatmul.mubr.msk.bf16.vlgmr.msra.gmra.mrb[16].mxu0 %vm1085_vm5, %v3061_v24 }
 0x70b   : > { %2484 = vmatprep.mubr.msk.bf16.mxu0 %vm2777_vm3, %v2776_v19  ;;  %2483 = vmatpush3.bf16.msra.mxu0 %v1637_v56  ;;  %v1860_v31 = vld [vmem:[#allocation3 + $0x18] sm:$0xff] }
 0x70c   : > { %2494 = vmatprep.subr.bf16.mxu0 %v2776_v19 }
 0x7d5   : > { %v1456_v34 = vpop.f32.mrb[12].mxu0 }
 0x7d6   : > { %v3141_v35 = vadd.f32 %v1502_v28, %v1456_v34  ;;  %v2460_v36 = vpop.f32.mrb[13].mxu0 }
 0x7d7   : > { %v1459_v37 = vpop.f32.mrb[14].mxu0 }
 0x7d8   : > { %v2461_v38 = vpop.f32.mrb[15].mxu0 }
 0x7dd   : > { %v1567_v40 = vpop.f32.mrb[16].mxu0 }
 0x7de   : > { %v1568_v41 = vadd.f32 %v2257_v39, %v1567_v40  ;;  %v2474_v42 = vpop.f32.mrb[17].mxu0 }
 0x7df   : > { %v1570_v43 = vpop.f32.mrb[18].mxu0 }
 0x7e0   : > { %v1573_v44 = vpack.c.bf16 %v1568_v41, %v1568_v41  ;;  %v2475_v45 = vpop.f32.mrb[19].mxu0 }
 0x7e2   : > { %2479 = vmatmul.mubr.msk.bf16.vlgmr.msra.gmra.mrb[16].mxu1 %vm1131_vm4, %v1573_v44 }
 0x7e3   : > { %2490 = vmatprep.mubr.msk.bf16.mxu1 %vm2777_vm3, %v2776_v19  ;;  %2489 = vmatpush3.bf16.msra.mxu1 %v1688_v58 }
 0x7e4   : > { %2502 = vmatprep.subr.bf16.mxu1 %v2776_v19 }
 0x8b5   : > { %v1616_v46 = vpop.f32.mrb[16].mxu1 }
 0x8b6   : > { %v2480_v47 = vpop.f32.mrb[17].mxu1  ;;  %v1622_v48 = vsel %vm1178_vm6, %v1616_v46, -inf }
 0x8b7   : > { %1623 = vmax.xlane.f32.xlu0 %v1622_v48  ;;  %v1619_v49 = vpop.f32.mrb[18].mxu1  ;;  %v2280_v47 = vld [vmem:[%s3313_s9] ss:$0 sm:$0xff] }
 0x8b8   : > { %v2481_v50 = vpop.f32.mrb[19].mxu1 }
 0x944   : > { %v1624_v51 = vpop.xlane.xlu0 %1623 }
 0x945   : > { %v1625_v52 = vsub.f32 %v1616_v46, %v1624_v51 }
 0x947   : > { %v1626_v53 = vmul.f32 1.442695, %v1625_v52 }
 0x949   : > { %2636 = vpow2.f32 %v1626_v53 }
 0x953   : > { %v2637_v54 = vpop.eup %2636 }
 0x954   : > { %v1628_v55 = vsel %vm1178_vm6, %v2637_v54, 0.0 }
 0x955   : > { %1629 = vadd.xlane.f32.xlu1 %v1628_v55 }
 0x9e2   : > { %v1630_v59 = vpop.xlane.xlu1 %1629 }
 0x9e3   : > { %2638 = vrcp.f32 %v1630_v59 }
 0x9ed   : > { %v2639_v60 = vpop.eup %2638 }
 0x9ee   : > { %v1632_v61 = vmul.f32 %v2639_v60, %v2637_v54 }
 0x9f0   : > { %v1633_v63 = vpack.c.bf16 %v1632_v61, %v1632_v61 }
 0x9f2   : > { %2262 = vst.msk [vmem:[%s2943_s10 + $0x8] sm:$0xf] %vm1191_vm7, %v1633_v63  ;;  %2485 = vmatmul.mubr.msk.bf16.vlgmr.msra.gmra.mrb[20].mxu0 %vm1178_vm6, %v1633_v63 }
 0x9f3   : > { %2495 = vmatpush3.bf16.msra.mxu0 %v2626_v62  ;;  %2498 = vmatprep.mubr.msk.bf16.mxu0 %vm2777_vm3, %v2776_v19 }
 0x9f4   : > { %2496 = vmatprep.subr.bf16.mxu0 %v2776_v19 }
 0x9f7   : > { %2497 = vmatpush3.bf16.msra.mxu0 %v2627_v0 }
 0x9f8   : > { %2508 = vmatprep.subr.bf16.mxu0 %v2776_v19 }
 0x9fa   : > { %2499 = vmatmul.mubr.msk.bf16.vlgmr.msra.gmra.mrb[24].mxu0 %vm1085_vm5, %v3061_v24  ;;  %v2271_v24 = vld [vmem:[%s3307_s3 + $0x3] ss:$0 sm:$0xff] }
 0x9fb   : > { %2510 = vmatprep.mubr.msk.bf16.mxu0 %vm2777_vm3, %v2776_v19  ;;  %2509 = vmatpush3.bf16.msra.mxu0 %v1860_v31 }
 0xac5   : > { %v1675_v2 = vpop.f32.mrb[20].mxu0 }
 0xac6   : > { %v1681_v3 = vpack.c.bf16 %v1675_v2, %v1675_v2  ;;  %v2486_v4 = vpop.f32.mrb[21].mxu0 }
 0xac7   : > { %v1678_v6 = vpop.f32.mrb[22].mxu0 }
 0xac8   : > { %v2487_v7 = vpop.f32.mrb[23].mxu0  ;;  %2491 = vmatmul.mubr.msk.bf16.vlgmr.msra.gmra.mrb[20].mxu1 %vm1131_vm4, %v1681_v3 }
 0xac9   : > { %2503 = vmatpush3.bf16.xpose.msra.mxu1 %v1803_v5  ;;  %2504 = vmatprep.mubr.msk.bf16.mxu1 %vm2777_vm3, %v2776_v19 }
 0xaca   : > { %2514 = vmatprep.subr.bf16.mxu1 %v2776_v19 }
 0xacd   : > { %v1790_v8 = vpop.f32.mrb[24].mxu0 }
 0xace   : > { %v1791_v9 = vadd.f32 %v2271_v24, %v1790_v8  ;;  %v2500_v10 = vpop.f32.mrb[25].mxu0 }
 0xacf   : > { %v1793_v11 = vpop.f32.mrb[26].mxu0 }
 0xad0   : > { %v1796_v12 = vpack.c.bf16 %v1791_v9, %v1791_v9  ;;  %v2501_v13 = vpop.f32.mrb[27].mxu0 }
 0xad2   : > { %2505 = vmatmul.mubr.msk.bf16.vlgmr.msra.gmra.mrb[24].mxu1 %vm1131_vm4, %v1796_v12 }
 0xad3   : > { %2516 = vmatprep.mubr.msk.bf16.mxu1 %vm2777_vm3, %v2776_v19  ;;  %2515 = vmatpush3.bf16.msra.mxu1 %v1911_v33 }
 0xb9b   : > { %v1724_v14 = vpop.f32.mrb[20].mxu1 }
 0xb9c   : > { %v1730_v15 = vadd.f32 %v1724_v14, %v3141_v35  ;;  %v2492_v16 = vpop.f32.mrb[21].mxu1 }
 0xb9d   : > { %v1727_v17 = vpop.f32.mrb[22].mxu1 }
 0xb9e   : > { %v2493_v18 = vpop.f32.mrb[23].mxu1 }
 0xba5   : > { %v1839_v20 = vpop.f32.mrb[24].mxu1 }
 0xba6   : > { %v2506_v22 = vpop.f32.mrb[25].mxu1  ;;  %v1845_v23 = vsel %vm1178_vm6, %v1839_v20, -inf }
 0xba7   : > { %1846 = vmax.xlane.f32.xlu0 %v1845_v23  ;;  %v1842_v25 = vpop.f32.mrb[26].mxu1 }
 0xba8   : > { %v2507_v26 = vpop.f32.mrb[27].mxu1 }
 0xc34   : > { %v1847_v27 = vpop.xlane.xlu0 %1846 }
 0xc35   : > { %v1848_v28 = vsub.f32 %v1839_v20, %v1847_v27 }
 0xc37   : > { %v1849_v29 = vmul.f32 1.442695, %v1848_v28 }
 0xc39   : > { %2640 = vpow2.f32 %v1849_v29 }
 0xc43   : > { %v2641_v30 = vpop.eup %2640 }
 0xc44   : > { %v1851_v19 = vsel %vm1178_vm6, %v2641_v30, 0.0 }
 0xc45   : > { %1852 = vadd.xlane.f32.xlu1 %v1851_v19 }
 0xcd2   : > { %v1853_v34 = vpop.xlane.xlu1 %1852 }
 0xcd3   : > { %2642 = vrcp.f32 %v1853_v34 }
 0xcdd   : > { %v2643_v35 = vpop.eup %2642 }
 0xcde   : > { %v1855_v36 = vmul.f32 %v2643_v35, %v2641_v30 }
 0xce0   : > { %v1856_v37 = vpack.c.bf16 %v1855_v36, %v1855_v36 }
 0xce2   : > { %2276 = vst.msk [vmem:[%s2943_s10 + $0xc] sm:$0xf] %vm1191_vm7, %v1856_v37  ;;  %2511 = vmatmul.mubr.msk.bf16.vlgmr.msra.gmra.mrb[28].mxu0 %vm1178_vm6, %v1856_v37  ;;  %s2652_s10 = scalar_lea.vmem %s2651_s30, 512 }
 0xce3   : > { %p2654_p6 = scmp.lt.s32.totalorder %s2652_s10, %s2646_s12 }
 0xce5   : > { %p2655_p7 = por %p2654_p6, %p2653_p5 }
 0xce7   : > { %p2656_p9 = pnand %p2655_p7, %p2649_p4 }
 0xdb5   : > { %v1898_v38 = vpop.f32.mrb[28].mxu0 }
 0xdb6   : > { %v1904_v39 = vpack.c.bf16 %v1898_v38, %v1898_v38  ;;  %v2512_v40 = vpop.f32.mrb[29].mxu0 }
 0xdb7   : > { %v1901_v41 = vpop.f32.mrb[30].mxu0 }
 0xdb8   : > { %v2513_v42 = vpop.f32.mrb[31].mxu0  ;;  %2517 = vmatmul.mubr.msk.bf16.vlgmr.msra.gmra.mrb[28].mxu1 %vm1131_vm4, %v1904_v39 }
 0xe8b   : > { %v1947_v43 = vpop.f32.mrb[28].mxu1 }
 0xe8c   : > { %v1953_v44 = vadd.f32 %v1947_v43, %v1730_v15  ;;  %v2518_v45 = vpop.f32.mrb[29].mxu1 }
 0xe8d   : > { %v1950_v46 = vpop.f32.mrb[30].mxu1 }
 0xe8e   : > { %v1954_v48 = vadd.f32 %v1953_v44, %v3053_v21  ;;  %v2519_v49 = vpop.f32.mrb[31].mxu1 }
 0xe90   : > { %v1962_v50 = vadd.f32 %v2280_v47, %v1954_v48 }
 0xe92   : > { %v1963_v51 = vsel %vm1085_vm5, %v1962_v50, 0.0 }
 0xe93   : > { %1964 = vadd.xlane.f32.xlu0 %v1963_v51 }
 0xf20   : > { %v1965_v52 = vpop.xlane.xlu0 %1964 }
 0xf21   : > { %v1967_v53 = vmul.f32 0.03125, %v1965_v52 }
 0xf23   : > { %v1968_v54 = vsub.f32 %v1962_v50, %v1967_v53 }
 0xf25   : > { %v1969_v55 = vmul.f32 %v1968_v54, %v1968_v54 }
 0xf27   : > { %v1970_v56 = vsel %vm1085_vm5, %v1969_v55, 0.0 }
 0xf28   : > { %1971 = vadd.xlane.f32.xlu1 %v1970_v56 }
 0xf29   : > { %2659 = shalt.err (!%p2656_p9)
}
 0xf2a   : > { %s2660_s13 = scalar_lea.hbm %s3208_s27, 256  ;;  %s2664_s26 = scalar_lea.hbm %s3346_s19, 1024 }
 0xf2b   : > { %p2661_p10 = scmp.ne.s32.totalorder %s3208_s27, %s2660_s13  ;;  %p2665_p13 = scmp.lt.u32.totalorder %s3208_s27, %s3346_s19 }
 0xf2c   : > { %p2666_p0 = scmp.lt.u32.totalorder %s2664_s26, %s2660_s13  ;;  %p2668_p2 = scmp.lt.u32.totalorder %s2660_s13, %s3208_s27 }
 0xf2d   : > { %p2662_p11 = pnand %p2661_p10, %p2904_p3 }
 0xf2e   : > { %p2667_p1 = por %p2666_p0, %p2665_p13 }
 0xf2f   : > { %p2663_p12 = pneg %p2662_p11 }
 0xf30   : > { %p2669_p4 = por %p2668_p2, %p2667_p1 }
 0xf32   : > { %p2670_p5 = pnand %p2669_p4, %p2663_p12 }
 0xf34   : > { %2673 = shalt.err (!%p2670_p5)
}
 0xf35   : > { %s2779_s18 = smov 64   ;;  %s2780_s24 = smov 128  }
 0xf36   : > { %s2781_s12 = smov 4   ;;  %s2285_s25 = sshll.u32 %s2760_s29, 1 }
 0xf37   : > { %2521 = dma.vmem_to_hbm [thread:$0]  (%p2904_p3), %s3210_s16, 256, %s3208_s27, %s2000_s14, %s2779_s18, %s2780_s24, %s2781_s12  }
 0xf38   : > { %s2011_s30 = sadd.s32 %s2756_s28, %s2285_s25  ;;  %s3347_s15 = sld [smem:[#allocation20_spill]] }
 0xf39   : > { %s3348_s20 = sld [smem:[#allocation21_spill]]  ;;  %s2286_s16 = sshll.u32 %s2011_s30, 7 }
 0xf3a   : > { %s2015_s27 = sshll.u32 %s2941_s11, 4  ;;  %s3349_s18 = sld [smem:[#allocation22_spill]]  ;;  %s3250_s27 = int_to_ptr.vmem [resolvable:$true] %s2015_s27 }
 0xf3b   : > { %s1995_s28 = scalar_lea.sflag [#allocation5], %s2925_s17  ;;  %s2674_s24 = scalar_lea.vmem %s3250_s27, 128 }
 0xf3c   : > { %p2675_p6 = scmp.ne.s32.totalorder %s3250_s27, %s2674_s24  ;;  %s2782_s12 = smov [#allocation4]  }
 0xf3d   : > { %s2678_s25 = sshll.u32 %s2782_s12, 4  ;;  %s2679_s25 = int_to_ptr.vmem [resolvable:$false] %s2678_s25 }
 0xf3e   : > { %v2281_v60 = vld [vmem:[%s3347_s15] ss:$0 sm:$0xff]  ;;  %p2676_p7 = pnand %p2675_p6, %p2904_p3  ;;  %s2680_s30 = scalar_lea.vmem %s2679_s25, 256 }
 0xf3f   : > { %v2282_v62 = vld [vmem:[%s3348_s20] ss:$0 sm:$0xff]  ;;  %p2681_p10 = scmp.lt.s32.totalorder %s3250_s27, %s2679_s25  ;;  %p2682_p11 = scmp.lt.s32.totalorder %s2680_s30, %s2674_s24 }
 0xf40   : > { %s3248_s29 = scalar_lea.hbm %s3349_s18, %s2286_s16  ;;  %p2677_p9 = pneg %p2676_p7 }
 0xf41   : > { %p2683_p12 = por %p2682_p11, %p2681_p10 }
 0xf43   : > { %p2684_p13 = pnand %p2683_p12, %p2677_p9 }
 0xfb5   : > { %v1972_v21 = vpop.xlane.xlu1 %1971 }
 0xfb6   : > { %v1973_v57 = vmul.f32 0.03125, %v1972_v21 }
 0xfb8   : > { %v1974_v58 = vadd.f32 1e-05, %v1973_v57 }
 0xfba   : > { %2644 = vrsqrt.f32 %v1974_v58 }
 0xfc4   : > { %v2645_v59 = vpop.eup %2644 }
 0xfc5   : > { %v1976_v61 = vmul.f32 %v2645_v59, %v1968_v54 }
 0xfc7   : > { %v1984_v63 = vmul.f32 %v2281_v60, %v1976_v61 }
 0xfc9   : > { %v1992_v0 = vadd.f32 %v2282_v62, %v1984_v63 }
 0xfcb   : > { %1993 = vst.msk [vmem:[%s2941_s11] sm:$0xff] %vm1085_vm5, %v1992_v0 }
 0xfcc   : > { %2687 = shalt.err (!%p2684_p13)
}
 0xfcd   : > { %s2688_s11 = scalar_lea.hbm %s3248_s29, 128  ;;  %s2692_s13 = scalar_lea.hbm %s3349_s18, 512 }
 0xfce   : > { %p2689_p0 = scmp.ne.s32.totalorder %s3248_s29, %s2688_s11  ;;  %p2693_p4 = scmp.lt.u32.totalorder %s3248_s29, %s3349_s18 }
 0xfcf   : > { %p2694_p5 = scmp.lt.u32.totalorder %s2692_s13, %s2688_s11  ;;  %p2696_p7 = scmp.lt.u32.totalorder %s2688_s11, %s3248_s29 }
 0xfd0   : > { %p2690_p1 = pnand %p2689_p0, %p2904_p3 }
 0xfd1   : > { %p2695_p6 = por %p2694_p5, %p2693_p4 }
 0xfd2   : > { %p2691_p2 = pneg %p2690_p1 }
 0xfd3   : > { %p2697_p9 = por %p2696_p7, %p2695_p6 }
 0xfd5   : > { %p2698_p10 = pnand %p2697_p9, %p2691_p2 }
 0xfd7   : > { %2701 = shalt.err (!%p2698_p10)
}
 0xfd8   : > { %2520 = dma.vmem_to_hbm [thread:$0]  (%p2904_p3), %s3250_s27, 128, %s3248_s29, %s1995_s28  }
 0xfd9 PF: > { %s3350_s26 = sld [smem:[#allocation15_spill]]  ;;  %s3351_s20 = sld [smem:[#allocation10_spill]] }
 0xfdf   : > { %p2531_p11 = scmp.ge.s32.totalorder %s3350_s26, 2  ;;  %s2044_s14 = sand.u32 1, %s3351_s20  }
 0xfe0   : > { %s2045_s23 = scalar_lea.sflag [#allocation5], %s2044_s14 }
 0xfe1   : > { %p2525_p12 = pnand %p2531_p11, %p2913_p8 }
 0xfe3   : > { %2735 = dma.done.wait (!%p2525_p12), %s2045_s23, 128  }
 0xfe4   : > { %2737 = vsyncadd (!%p2525_p12), %s2045_s23, 4294967168  ;;  %s2054_s24 = scalar_lea.sflag [#allocation7], %s2044_s14 }
 0xfe5   : > { %2739 = dma.done.wait (!%p2525_p12), %s2054_s24, 256  }
 0xfe6   : > { %2741 = vsyncadd (!%p2525_p12), %s2054_s24, 4294967040  ;;  %s30_s15 = sadd.s32 1, %s3350_s26   ;;  %s3353_s25 = sld [smem:[#allocation11_spill]] }
 0xfe7   : > { %p27_p13 = scmp.ge.s32.totalorder %s30_s15, 6   ;;  %s3354_s26 = sld [smem:[#allocation12_spill]] }
 0xfe8   : > { %s3355_s27 = sld [smem:[#allocation19_spill]]  ;;  %s3356_s28 = sld [smem:[#allocation13_spill]] }
 0xfe9   : > { %s3357_s29 = sld [smem:[#allocation14_spill]]  ;;  %s3358_s30 = sld [smem:[#allocation16_spill]] }
 0xfea   : > { %s3359_s14 = sld [smem:[#allocation17_spill]]  ;;  %29 = sbr.rel (!%p27_p13) target bundleno = 12 (0xc), region = 163 }
 0xff1   :  { %2059 = vsyncpa [#allocation5], 1 }
 0xff2   :  { %2061 = vsyncpa [#allocation5 + $0x1], 1 }
 0xff3   :  { %2062 = vsyncpa [#allocation7], 1 }
 0xff4   :  { %2064 = vsyncpa [#allocation7 + $0x1], 1 }

</bundles_post_ra>
